<compile_context>
chip_gen: v7x
topology: tpu7x:2x2x1
jax: 0.10.0
libtpu: 0.0.40
codegen_flags: <defaults>
</compile_context>

<pallas_src>
import math
import functools

import jax
import jax.numpy as jnp
from jax import lax
from jax.experimental import pallas as pl
from jax.experimental.pallas import tpu as pltpu

EPS = 1e-6
MASK_VALUE = -0.7 * float(jnp.finfo(jnp.float32).max)   # finite "minus infinity"


# --------------------------------------------------------------------------------------
# helpers used inside the kernel
# --------------------------------------------------------------------------------------
def _layer_norm(x, alpha, bias):
    """Spec LayerNormalization: alpha * (x - mean) / (std_unbiased + eps) + bias."""
    d = x.shape[-1]
    mean = jnp.mean(x, axis=-1, keepdims=True)
    xc = x - mean
    var = jnp.sum(xc * xc, axis=-1, keepdims=True) * (1.0 / (d - 1))   # unbiased (torch .std())
    inv = pl.reciprocal(jnp.sqrt(var) + EPS, approx=True)              # EUP sqrt + rcp
    return alpha * (xc * inv) + bias


def _rope(t, cos, sin, *, mode):
    """x*cos + rotate_half(x)*sin with interleaved pairs, on (rows, d_attn).

    rotate_half(x)[j] = -x[j+1] for even j, x[j-1] for odd j.  Neighbour access is a
    +/-1 lane rotation (pltpu.roll, XLU) plus an even/odd parity select; `mode` picks
    the roll shift convention (probed at wrapper level) or a slice+concat fallback.
    Pairs never straddle head boundaries (d_h even), so the circular wraparound values
    are never selected.
    """
    d = t.shape[-1]
    if mode == "roll_np":        # pltpu.roll(x, s)[j] == x[j - s]  (np.roll convention)
        nxt = pltpu.roll(t, d - 1, axis=1)   # t[:, j+1]
        prv = pltpu.roll(t, 1, axis=1)       # t[:, j-1]
    elif mode == "roll_inv":     # opposite convention
        nxt = pltpu.roll(t, 1, axis=1)
        prv = pltpu.roll(t, d - 1, axis=1)
    else:                        # "concat" fallback: explicit lane shifts
        nxt = jnp.concatenate([t[:, 1:], t[:, :1]], axis=1)
        prv = jnp.concatenate([t[:, -1:], t[:, :-1]], axis=1)
    parity = lax.broadcasted_iota(jnp.int32, t.shape, 1) % 2
    rot = jnp.where(parity == 0, -nxt, prv)
    return t * cos + rot * sin


@functools.lru_cache(maxsize=None)
def _rope_shift_mode() -> str:
    """Probe pltpu.roll's rotation convention once on the actual TPU lowering."""
    try:
        lanes = 128
        x = jnp.tile(jnp.arange(lanes, dtype=jnp.float32)[None, :], (8, 1))

        def k(x_ref, o_ref):
            o_ref[...] = pltpu.roll(x_ref[...], 1, axis=1)

        y = pl.pallas_call(k, out_shape=jax.ShapeDtypeStruct((8, lanes), jnp.float32))(x)
        first = float(y[0, 0])
        if first == float(lanes - 1):
            return "roll_np"
        if first == 1.0:
            return "roll_inv"
        return "concat"
    except Exception:
        return "concat"


# --------------------------------------------------------------------------------------
# fused decoder-block kernel
# --------------------------------------------------------------------------------------
def decoder_block_kernel(xq_ref, xkv_ref,
                         ln1_a_ref, ln1_b_ref,
                         wq_ref, wk_ref, wv_ref, woh_ref,
                         cos_ref, sin_ref,
                         ln2_a_ref, ln2_b_ref,
                         w1_ref, b1_ref, w2_ref, b2_ref,
                         o_ref,
                         *, n_heads: int, d_attn: int, rope_mode: str):
    bf = jnp.bfloat16
    xq = xq_ref[0]                      # (TQ, D)  query rows of this block
    xkv = xkv_ref[0]                    # (T,  D)  full sequence (keys / values)
    tq = xq.shape[0]
    d_h = d_attn // n_heads

    q_start = pl.multiple_of(pl.program_id(1) * tq, tq)

    # ---- multi-head self-attention (pre-norm) ----
    ln1_a = ln1_a_ref[...]
    ln1_b = ln1_b_ref[...]
    xq_n = _layer_norm(xq, ln1_a, ln1_b)
    xkv_n = _layer_norm(xkv, ln1_a, ln1_b)

    q = jnp.dot(xq_n.astype(bf), wq_ref[...], preferred_element_type=jnp.float32)   # (TQ, d_attn)
    k = jnp.dot(xkv_n.astype(bf), wk_ref[...], preferred_element_type=jnp.float32)  # (T,  d_attn)
    v = jnp.dot(xkv_n.astype(bf), wv_ref[...], preferred_element_type=jnp.float32)  # (T,  d_attn)

    # rotary tables: (T, d_attn), head-tiled in the wrapper
    cos_q = cos_ref[pl.ds(q_start, tq), :]
    sin_q = sin_ref[pl.ds(q_start, tq), :]

    scale = 1.0 / math.sqrt(d_attn)            # spec scales by sqrt(d_attn), not sqrt(d_h)
    q = _rope(q, cos_q, sin_q, mode=rope_mode) * scale
    k = _rope(k, cos_ref[...], sin_ref[...], mode=rope_mode)

    # head-batched layout (H, rows, d_h): two batched MXU einsums
    qh = jnp.stack([q[:, h * d_h:(h + 1) * d_h] for h in range(n_heads)], axis=0).astype(bf)
    kh = jnp.stack([k[:, h * d_h:(h + 1) * d_h] for h in range(n_heads)], axis=0).astype(bf)
    vh = jnp.stack([v[:, h * d_h:(h + 1) * d_h] for h in range(n_heads)], axis=0).astype(bf)

    s = jnp.einsum('hqd,hkd->hqk', qh, kh,
                   preferred_element_type=jnp.float32)           # (H, TQ, T)

    # in-kernel causal mask (global query row = q_start + local row)
    row = q_start + lax.broadcasted_iota(jnp.int32, s.shape, 1)
    col = lax.broadcasted_iota(jnp.int32, s.shape, 2)
    s = jnp.where(col > row, MASK_VALUE, s)

    m = jnp.max(s, axis=-1, keepdims=True)
    e = jnp.exp(s - m)
    p = e * pl.reciprocal(jnp.sum(e, axis=-1, keepdims=True), approx=True)

    ctx = jnp.einsum('hqk,hkd->hqd', p.astype(bf), vh,
                     preferred_element_type=jnp.float32)         # (H, TQ, d_h)

    # output projection: per-head matmul against w_o reshaped to (H, d_h, D), then
    # summed over heads (concat of heads folded into the contraction)
    attn_h = jnp.einsum('hqd,hde->hqe', ctx.astype(bf), woh_ref[...],
                        preferred_element_type=jnp.float32)      # (H, TQ, D)
    attn = jnp.sum(attn_h, axis=0)                               # (TQ, D)

    x1 = xq + attn                        # residual 1 (dropout = identity in eval)

    # ---- feed-forward block (pre-norm) ----
    xn2 = _layer_norm(x1, ln2_a_ref[...], ln2_b_ref[...])
    hid = jnp.maximum(
        jnp.dot(xn2.astype(bf), w1_ref[...], preferred_element_type=jnp.float32) + b1_ref[...],
        0.0)
    ff = jnp.dot(hid.astype(bf), w2_ref[...], preferred_element_type=jnp.float32) + b2_ref[...]

    o_ref[0] = (x1 + ff).astype(o_ref.dtype)   # residual 2


# --------------------------------------------------------------------------------------
# wrappers: one pallas_call per decoder block, Python loop over layers
# --------------------------------------------------------------------------------------
def transformer_decoder_block(x, params, cos_full, sin_full, *, n_heads, d_attn, q_block=None):
    """x: (B, T, D) f32.  cos_full/sin_full: (T, d_attn) head-tiled rotary tables."""
    B, T, D = x.shape
    d_ff = params["w1"].shape[1]
    d_h = d_attn // n_heads

    tq = q_block if q_block is not None else min(T, 256)
    if T % tq != 0:               # keep a single full-sequence query block for ragged T
        tq = T
    nq = T // tq

    rope_mode = _rope_shift_mode()

    bf = jnp.bfloat16
    woh = params["wo"].reshape(n_heads, d_h, D)     # (H, d_h, D) per-head output proj
    ordered = [
        params["ln1_a"], params["ln1_b"],
        params["wq"].astype(bf), params["wk"].astype(bf), params["wv"].astype(bf),
        woh.astype(bf),
        cos_full, sin_full,
        params["ln2_a"], params["ln2_b"],
        params["w1"].astype(bf), params["b1"],
        params["w2"].astype(bf), params["b2"],
    ]

    def _const_spec(a):
        nd = a.ndim
        return pl.BlockSpec(a.shape, lambda b, qi, _nd=nd: (0,) * _nd)

    # rough per-step working set -> explicit scoped-VMEM limit with headroom
    weight_bytes = sum(int(a.size) * a.dtype.itemsize for a in ordered)
    act_bytes = 4 * (2 * tq * D + 2 * T * D            # x blocks (in / out / normed)
                     + 3 * T * d_attn + 2 * tq * d_attn  # q/k/v (+ rotated)
                     + 3 * n_heads * tq * T              # scores / probs / exp
                     + tq * d_ff)                        # FFN hidden
    vmem_limit = int(min(64 * 1024 * 1024,
                         max(32 * 1024 * 1024, 3 * (weight_bytes + act_bytes))))

    kernel = functools.partial(decoder_block_kernel,
                               n_heads=n_heads, d_attn=d_attn, rope_mode=rope_mode)
    return pl.pallas_call(
        kernel,
        out_shape=jax.ShapeDtypeStruct((B, T, D), jnp.float32),
        grid_spec=pltpu.PrefetchScalarGridSpec(
            num_scalar_prefetch=0,
            grid=(B, nq),
            in_specs=[pl.BlockSpec((1, tq, D), lambda b, qi: (b, qi, 0)),   # query rows
                      pl.BlockSpec((1, T, D), lambda b, qi: (b, 0, 0))]     # full seq (K/V)
                     + [_const_spec(a) for a in ordered],
            out_specs=pl.BlockSpec((1, tq, D), lambda b, qi: (b, qi, 0)),
        ),
        compiler_params=pltpu.CompilerParams(
            dimension_semantics=("parallel", "parallel"),
            vmem_limit_bytes=vmem_limit),
    )(x, x, *ordered)


def transformer_decoder(x, layer_params, cos_full, sin_full, *, n_heads, d_attn, q_block=None):
    """TransformerDecoder.forward: sequentially apply every decoder block."""
    for p in layer_params:
        x = transformer_decoder_block(x, p, cos_full, sin_full,
                                      n_heads=n_heads, d_attn=d_attn, q_block=q_block)
    return x


# --------------------------------------------------------------------------------------
# pure-JAX reference (faithful to the torch spec) for verification
# --------------------------------------------------------------------------------------
def reference_decoder(x, layer_params, cos_h, sin_h, *, n_heads, d_attn):
    B, T, D = x.shape
    d_h = d_attn // n_heads

    def ln(t, a, b_):
        mean = t.mean(-1, keepdims=True)
        var = ((t - mean) ** 2).sum(-1, keepdims=True) / (t.shape[-1] - 1)
        return a * (t - mean) / (jnp.sqrt(var) + EPS) + b_

    def rotate_half(t):                  # interleaved pairs: (x0, x1) -> (-x1, x0)
        t2 = t.reshape(*t.shape[:-1], -1, 2)
        return jnp.stack([-t2[..., 1], t2[..., 0]], axis=-1).reshape(t.shape)

    r = jnp.arange(T)
    mask = jnp.where(r[None, :] > r[:, None], -jnp.inf, 0.0).astype(jnp.float32)

    def block(xb, p):                    # xb: (T, D)
        xn = ln(xb, p["ln1_a"], p["ln1_b"])
        q = xn @ p["wq"]; k = xn @ p["wk"]; v = xn @ p["wv"]
        qh = q.reshape(T, n_heads, d_h).transpose(1, 0, 2)
        kh = k.reshape(T, n_heads, d_h).transpose(1, 0, 2)
        vh = v.reshape(T, n_heads, d_h).transpose(1, 0, 2)
        qh = qh * cos_h + rotate_half(qh) * sin_h
        kh = kh * cos_h + rotate_half(kh) * sin_h
        s = qh @ kh.transpose(0, 2, 1) / math.sqrt(d_attn) + mask
        s = jax.nn.softmax(s, axis=-1)
        attn = (s @ vh).transpose(1, 0, 2).reshape(T, d_attn) @ p["wo"]
        x1 = xb + attn
        xn2 = ln(x1, p["ln2_a"], p["ln2_b"])
        h = jax.nn.relu(xn2 @ p["w1"] + p["b1"])
        return x1 + h @ p["w2"] + p["b2"]

    for p in layer_params:
        x = jax.vmap(lambda xb, _p=p: block(xb, _p))(x)
    return x


# --------------------------------------------------------------------------------------
if __name__ == "__main__":
    B, T = 2, 8
    D = 128                      # d_model (128 -> fully lane-aligned layouts)
    d_attn = 128
    n_heads = 4
    d_h = d_attn // n_heads
    d_ff = 4 * D
    n_layers = 2

    root = jax.random.PRNGKey(0)
    key_x, key_p = jax.random.split(root)

    def uinit(k, shape, fan_in):
        lim = 1.0 / math.sqrt(fan_in)
        w = jax.random.uniform(k, shape, jnp.float32, -lim, lim)
        # keep parameters bf16-exact so the f32 reference and the bf16-MXU kernel
        # see exactly the same weight values
        return w.astype(jnp.bfloat16).astype(jnp.float32)

    layer_params = []
    pk = key_p
    for _ in range(n_layers):
        pk, *ks = jax.random.split(pk, 9)
        layer_params.append({
            "ln1_a": jnp.ones((1, D), jnp.float32), "ln1_b": jnp.zeros((1, D), jnp.float32),
            "wq": uinit(ks[0], (D, d_attn), D),
            "wk": uinit(ks[1], (D, d_attn), D),
            "wv": uinit(ks[2], (D, d_attn), D),
            "wo": uinit(ks[3], (d_attn, D), d_attn),
            "ln2_a": jnp.ones((1, D), jnp.float32), "ln2_b": jnp.zeros((1, D), jnp.float32),
            "w1": uinit(ks[4], (D, d_ff), D), "b1": uinit(ks[5], (1, d_ff), D),
            "w2": uinit(ks[6], (d_ff, D), d_ff), "b2": uinit(ks[7], (1, D), d_ff),
        })

    # rotary tables (lucidrains interleaved convention, theta = 10000)
    inv_freq = 1.0 / (10000.0 ** (jnp.arange(0, d_h, 2, dtype=jnp.float32) / d_h))
    t = jnp.arange(T, dtype=jnp.float32)
    freqs = jnp.repeat(t[:, None] * inv_freq[None, :], 2, axis=-1)       # (T, d_h)
    cos_h, sin_h = jnp.cos(freqs), jnp.sin(freqs)
    cos_full = jnp.tile(cos_h, (1, n_heads))                              # (T, d_attn)
    sin_full = jnp.tile(sin_h, (1, n_heads))

    x = jax.random.normal(key_x, (B, T, D), jnp.float32)

    out = transformer_decoder(x, layer_params, cos_full, sin_full,
                              n_heads=n_heads, d_attn=d_attn)
    out = jax.block_until_ready(out)

    with jax.default_matmul_precision("highest"):
        ref = jax.block_until_ready(
            reference_decoder(x, layer_params, cos_h, sin_h,
                              n_heads=n_heads, d_attn=d_attn))

    assert out.shape == (B, T, D)
    assert bool(jnp.all(jnp.isfinite(out)))
    err = float(jnp.max(jnp.abs(out - ref)))
    assert bool(jnp.allclose(out, ref, rtol=4e-2, atol=4e-2)), \
        f"mismatch vs reference, max|err|={err}"
    print("KERNEL_OK")
</pallas_src>

<mosaic_0001>
module attributes {stable_mosaic.version = 11 : i64} {
  func.func @k(%arg0: memref<8x128xf32, #tpu.memory_space<vmem>>, %arg1: memref<8x128xf32, #tpu.memory_space<vmem>>) attributes {dimension_semantics = [], scalar_prefetch = 0 : i64, scratch_operands = 0 : i64, tpu.core_type = #tpu.core_type<tc>} {
    %c0 = arith.constant 0 : index
    %c0_0 = arith.constant 0 : index
    %0 = vector.load %arg0[%c0, %c0_0] : memref<8x128xf32, #tpu.memory_space<vmem>>, vector<8x128xf32>
    %c1_i32 = arith.constant 1 : i32
    %1 = tpu.dynamic_rotate %0 by %c1_i32 dim 1 : vector<8x128xf32>, i32 -> vector<8x128xf32>
    %c0_1 = arith.constant 0 : index
    %c0_2 = arith.constant 0 : index
    %2 = vector.load %arg1[%c0_1, %c0_2] : memref<8x128xf32, #tpu.memory_space<vmem>>, vector<8x128xf32>
    tpu.vector_store %arg1[%c0_1, %c0_2], %1 {strides = array<i32>} : memref<8x128xf32, #tpu.memory_space<vmem>>, vector<8x128xf32>,
    return
  }
}

module attributes {stable_mosaic.version = 11 : i64} {
  func.func @decoder_block_kernel(%arg0: i32, %arg1: i32, %arg2: memref<1x8x128xf32, #tpu.memory_space<vmem>>, %arg3: memref<1x8x128xf32, #tpu.memory_space<vmem>>, %arg4: memref<1x128xf32, #tpu.memory_space<vmem>>, %arg5: memref<1x128xf32, #tpu.memory_space<vmem>>, %arg6: memref<128x128xbf16, #tpu.memory_space<vmem>>, %arg7: memref<128x128xbf16, #tpu.memory_space<vmem>>, %arg8: memref<128x128xbf16, #tpu.memory_space<vmem>>, %arg9: memref<4x32x128xbf16, #tpu.memory_space<vmem>>, %arg10: memref<8x128xf32, #tpu.memory_space<vmem>>, %arg11: memref<8x128xf32, #tpu.memory_space<vmem>>, %arg12: memref<1x128xf32, #tpu.memory_space<vmem>>, %arg13: memref<1x128xf32, #tpu.memory_space<vmem>>, %arg14: memref<128x512xbf16, #tpu.memory_space<vmem>>, %arg15: memref<1x512xf32, #tpu.memory_space<vmem>>, %arg16: memref<512x128xbf16, #tpu.memory_space<vmem>>, %arg17: memref<1x128xf32, #tpu.memory_space<vmem>>, %arg18: memref<1x8x128xf32, #tpu.memory_space<vmem>>) attributes {dimension_semantics = [#tpu.dimension_semantics<parallel>, #tpu.dimension_semantics<parallel>], iteration_bounds = array<i64: 2, 1>, scalar_prefetch = 0 : i64, scratch_operands = 0 : i64, tpu.core_type = #tpu.core_type<tc>, window_params = [{transform_indices = @transform_0, window_bounds = array<i64: 1, 8, 128>}, {transform_indices = @transform_1, window_bounds = array<i64: 1, 8, 128>}, {pipeline_mode = #tpu.pipeline_mode<synchronous>, transform_indices = @transform_2, window_bounds = array<i64: 1, 128>}, {pipeline_mode = #tpu.pipeline_mode<synchronous>, transform_indices = @transform_3, window_bounds = array<i64: 1, 128>}, {pipeline_mode = #tpu.pipeline_mode<synchronous>, transform_indices = @transform_4, window_bounds = array<i64: 128, 128>}, {pipeline_mode = #tpu.pipeline_mode<synchronous>, transform_indices = @transform_5, window_bounds = array<i64: 128, 128>}, {pipeline_mode = #tpu.pipeline_mode<synchronous>, transform_indices = @transform_6, window_bounds = array<i64: 128, 128>}, {pipeline_mode = #tpu.pipeline_mode<synchronous>, transform_indices = @transform_7, window_bounds = array<i64: 4, 32, 128>}, {pipeline_mode = #tpu.pipeline_mode<synchronous>, transform_indices = @transform_8, window_bounds = array<i64: 8, 128>}, {pipeline_mode = #tpu.pipeline_mode<synchronous>, transform_indices = @transform_9, window_bounds = array<i64: 8, 128>}, {pipeline_mode = #tpu.pipeline_mode<synchronous>, transform_indices = @transform_10, window_bounds = array<i64: 1, 128>}, {pipeline_mode = #tpu.pipeline_mode<synchronous>, transform_indices = @transform_11, window_bounds = array<i64: 1, 128>}, {pipeline_mode = #tpu.pipeline_mode<synchronous>, transform_indices = @transform_12, window_bounds = array<i64: 128, 512>}, {pipeline_mode = #tpu.pipeline_mode<synchronous>, transform_indices = @transform_13, window_bounds = array<i64: 1, 512>}, {pipeline_mode = #tpu.pipeline_mode<synchronous>, transform_indices = @transform_14, window_bounds = array<i64: 512, 128>}, {pipeline_mode = #tpu.pipeline_mode<synchronous>, transform_indices = @transform_15, window_bounds = array<i64: 1, 128>}, {transform_indices = @transform_16, window_bounds = array<i64: 1, 8, 128>}]} {
    %c0 = arith.constant 0 : index
    %c0_0 = arith.constant 0 : index
    %c0_1 = arith.constant 0 : index
    %0 = vector.load %arg2[%c0, %c0_0, %c0_1] : memref<1x8x128xf32, #tpu.memory_space<vmem>>, vector<1x8x128xf32>
    %1 = vector.shape_cast %0 : vector<1x8x128xf32> to vector<8x128xf32>
    %c0_2 = arith.constant 0 : index
    %c0_3 = arith.constant 0 : index
    %c0_4 = arith.constant 0 : index
    %2 = vector.load %arg3[%c0_2, %c0_3, %c0_4] : memref<1x8x128xf32, #tpu.memory_space<vmem>>, vector<1x8x128xf32>
    %3 = vector.shape_cast %2 : vector<1x8x128xf32> to vector<8x128xf32>
    %c8_i32 = arith.constant 8 : i32
    %4 = arith.muli %arg1, %c8_i32 : i32
    %5 = tpu.assume_multiple %4, 8 : i32
    %c0_5 = arith.constant 0 : index
    %c0_6 = arith.constant 0 : index
    %6 = vector.load %arg4[%c0_5, %c0_6] : memref<1x128xf32, #tpu.memory_space<vmem>>, vector<1x128xf32>
    %c0_7 = arith.constant 0 : index
    %c0_8 = arith.constant 0 : index
    %7 = vector.load %arg5[%c0_7, %c0_8] : memref<1x128xf32, #tpu.memory_space<vmem>>, vector<1x128xf32>
    %cst = arith.constant dense<0.000000e+00> : vector<8xf32>
    %8 = vector.multi_reduction <add>, %1, %cst [1] : vector<8x128xf32> to vector<8xf32>
    %9 = vector.shape_cast %8 : vector<8xf32> to vector<8x1xf32>
    %cst_9 = arith.constant 1.280000e+02 : f32
    %10 = vector.broadcast %cst_9 : f32 to vector<8x1xf32>
    %11 = arith.divf %9, %10 : vector<8x1xf32>
    %12 = vector.broadcast %11 : vector<8x1xf32> to vector<8x128xf32>
    %13 = arith.subf %1, %12 : vector<8x128xf32>
    %14 = arith.mulf %13, %13 : vector<8x128xf32>
    %cst_10 = arith.constant dense<0.000000e+00> : vector<8xf32>
    %15 = vector.multi_reduction <add>, %14, %cst_10 [1] : vector<8x128xf32> to vector<8xf32>
    %16 = vector.shape_cast %15 : vector<8xf32> to vector<8x1xf32>
    %cst_11 = arith.constant 0.00787401571 : f32
    %17 = vector.broadcast %cst_11 : f32 to vector<8x1xf32>
    %18 = arith.mulf %16, %17 : vector<8x1xf32>
    %19 = math.sqrt %18 : vector<8x1xf32>
    %cst_12 = arith.constant 9.99999997E-7 : f32
    %20 = vector.broadcast %cst_12 : f32 to vector<8x1xf32>
    %21 = arith.addf %19, %20 : vector<8x1xf32>
    %22 = tpu.reciprocal %21 {approx = true} : vector<8x1xf32> -> vector<8x1xf32>
    %23 = vector.broadcast %22 : vector<8x1xf32> to vector<8x128xf32>
    %24 = arith.mulf %13, %23 : vector<8x128xf32>
    %25 = vector.broadcast %6 : vector<1x128xf32> to vector<8x128xf32>
    %26 = arith.mulf %25, %24 : vector<8x128xf32>
    %27 = vector.broadcast %7 : vector<1x128xf32> to vector<8x128xf32>
    %28 = arith.addf %26, %27 : vector<8x128xf32>
    %cst_13 = arith.constant dense<0.000000e+00> : vector<8xf32>
    %29 = vector.multi_reduction <add>, %3, %cst_13 [1] : vector<8x128xf32> to vector<8xf32>
    %30 = vector.shape_cast %29 : vector<8xf32> to vector<8x1xf32>
    %cst_14 = arith.constant 1.280000e+02 : f32
    %31 = vector.broadcast %cst_14 : f32 to vector<8x1xf32>
    %32 = arith.divf %30, %31 : vector<8x1xf32>
    %33 = vector.broadcast %32 : vector<8x1xf32> to vector<8x128xf32>
    %34 = arith.subf %3, %33 : vector<8x128xf32>
    %35 = arith.mulf %34, %34 : vector<8x128xf32>
    %cst_15 = arith.constant dense<0.000000e+00> : vector<8xf32>
    %36 = vector.multi_reduction <add>, %35, %cst_15 [1] : vector<8x128xf32> to vector<8xf32>
    %37 = vector.shape_cast %36 : vector<8xf32> to vector<8x1xf32>
    %cst_16 = arith.constant 0.00787401571 : f32
    %38 = vector.broadcast %cst_16 : f32 to vector<8x1xf32>
    %39 = arith.mulf %37, %38 : vector<8x1xf32>
    %40 = math.sqrt %39 : vector<8x1xf32>
    %cst_17 = arith.constant 9.99999997E-7 : f32
    %41 = vector.broadcast %cst_17 : f32 to vector<8x1xf32>
    %42 = arith.addf %40, %41 : vector<8x1xf32>
    %43 = tpu.reciprocal %42 {approx = true} : vector<8x1xf32> -> vector<8x1xf32>
    %44 = vector.broadcast %43 : vector<8x1xf32> to vector<8x128xf32>
    %45 = arith.mulf %34, %44 : vector<8x128xf32>
    %46 = vector.broadcast %6 : vector<1x128xf32> to vector<8x128xf32>
    %47 = arith.mulf %46, %45 : vector<8x128xf32>
    %48 = vector.broadcast %7 : vector<1x128xf32> to vector<8x128xf32>
    %49 = arith.addf %47, %48 : vector<8x128xf32>
    %50 = arith.truncf %28 : vector<8x128xf32> to vector<8x128xbf16>
    %c0_18 = arith.constant 0 : index
    %c0_19 = arith.constant 0 : index
    %51 = vector.load %arg6[%c0_18, %c0_19] : memref<128x128xbf16, #tpu.memory_space<vmem>>, vector<128x128xbf16>
    %cst_20 = arith.constant dense<0.000000e+00> : vector<8x128xf32>
    %52 = tpu.matmul %50, %51, %cst_20 {dimension_numbers = #tpu.dot_dimension_numbers<[1], [0], [0], [1], [0, 0, 1, 1], [], []>} : vector<8x128xbf16>, vector<128x128xbf16>, vector<8x128xf32> -> vector<8x128xf32>
    %53 = arith.truncf %49 : vector<8x128xf32> to vector<8x128xbf16>
    %c0_21 = arith.constant 0 : index
    %c0_22 = arith.constant 0 : index
    %54 = vector.load %arg7[%c0_21, %c0_22] : memref<128x128xbf16, #tpu.memory_space<vmem>>, vector<128x128xbf16>
    %cst_23 = arith.constant dense<0.000000e+00> : vector<8x128xf32>
    %55 = tpu.matmul %53, %54, %cst_23 {dimension_numbers = #tpu.dot_dimension_numbers<[1], [0], [0], [1], [0, 0, 1, 1], [], []>} : vector<8x128xbf16>, vector<128x128xbf16>, vector<8x128xf32> -> vector<8x128xf32>
    %56 = arith.truncf %49 : vector<8x128xf32> to vector<8x128xbf16>
    %c0_24 = arith.constant 0 : index
    %c0_25 = arith.constant 0 : index
    %57 = vector.load %arg8[%c0_24, %c0_25] : memref<128x128xbf16, #tpu.memory_space<vmem>>, vector<128x128xbf16>
    %cst_26 = arith.constant dense<0.000000e+00> : vector<8x128xf32>
    %58 = tpu.matmul %56, %57, %cst_26 {dimension_numbers = #tpu.dot_dimension_numbers<[1], [0], [0], [1], [0, 0, 1, 1], [], []>} : vector<8x128xbf16>, vector<128x128xbf16>, vector<8x128xf32> -> vector<8x128xf32>
    %59 = arith.index_cast %5 : i32 to index
    %c0_27 = arith.constant 0 : index
    %60 = vector.load %arg10[%59, %c0_27] : memref<8x128xf32, #tpu.memory_space<vmem>>, vector<8x128xf32>
    %61 = arith.index_cast %5 : i32 to index
    %c0_28 = arith.constant 0 : index
    %62 = vector.load %arg11[%61, %c0_28] : memref<8x128xf32, #tpu.memory_space<vmem>>, vector<8x128xf32>
    %63 = vector.extract_strided_slice %52 {offsets = [0, 1], sizes = [8, 127], strides = [1, 1]} : vector<8x128xf32> to vector<8x127xf32>
    %64 = vector.extract_strided_slice %52 {offsets = [0, 0], sizes = [8, 1], strides = [1, 1]} : vector<8x128xf32> to vector<8x1xf32>
    %65 = tpu.concatenate %63, %64 in 1 : vector<8x127xf32>, vector<8x1xf32> -> vector<8x128xf32>
    %66 = vector.extract_strided_slice %52 {offsets = [0, 127], sizes = [8, 1], strides = [1, 1]} : vector<8x128xf32> to vector<8x1xf32>
    %67 = vector.extract_strided_slice %52 {offsets = [0, 0], sizes = [8, 127], strides = [1, 1]} : vector<8x128xf32> to vector<8x127xf32>
    %68 = tpu.concatenate %66, %67 in 1 : vector<8x1xf32>, vector<8x127xf32> -> vector<8x128xf32>
    %69 = tpu.iota {dimensions = array<i32: 1>} : vector<8x128xi32>
    %c2_i32 = arith.constant 2 : i32
    %c0_i32 = arith.constant 0 : i32
    %70 = arith.cmpi eq, %c2_i32, %c0_i32 : i32
    %c1_i32 = arith.constant 1 : i32
    %71 = arith.select %70, %c1_i32, %c2_i32 : i32
    %72 = vector.broadcast %71 : i32 to vector<8x128xi32>
    %73 = arith.remsi %69, %72 : vector<8x128xi32>
    %c0_i32_29 = arith.constant 0 : i32
    %74 = vector.broadcast %c0_i32_29 : i32 to vector<8x128xi32>
    %75 = arith.cmpi ne, %73, %74 : vector<8x128xi32>
    %c0_i32_30 = arith.constant 0 : i32
    %76 = vector.broadcast %c0_i32_30 : i32 to vector<8x128xi32>
    %77 = arith.cmpi slt, %73, %76 : vector<8x128xi32>
    %c0_i32_31 = arith.constant 0 : i32
    %78 = arith.cmpi slt, %71, %c0_i32_31 : i32
    %79 = vector.broadcast %78 : i1 to vector<8x128xi1>
    %80 = vector.broadcast %79 : vector<8x128xi1> to vector<8x128xi1>
    %81 = arith.xori %77, %80 : vector<8x128xi1>
    %82 = arith.andi %81, %75 : vector<8x128xi1>
    %83 = vector.broadcast %71 : i32 to vector<8x128xi32>
    %84 = arith.addi %73, %83 : vector<8x128xi32>
    %85 = arith.select %82, %84, %73 : vector<8x128xi1>, vector<8x128xi32>
    %c0_i32_32 = arith.constant 0 : i32
    %86 = vector.broadcast %c0_i32_32 : i32 to vector<8x128xi32>
    %87 = arith.cmpi eq, %85, %86 : vector<8x128xi32>
    %cst_33 = arith.constant 0.000000e+00 : f32
    %88 = vector.broadcast %cst_33 : f32 to vector<8x128xf32>
    %89 = arith.subf %88, %65 : vector<8x128xf32>
    %90 = arith.select %87, %89, %68 : vector<8x128xi1>, vector<8x128xf32>
    %91 = arith.mulf %52, %60 : vector<8x128xf32>
    %92 = arith.mulf %90, %62 : vector<8x128xf32>
    %93 = arith.addf %91, %92 : vector<8x128xf32>
    %cst_34 = arith.constant 0.0883883461 : f32
    %94 = vector.broadcast %cst_34 : f32 to vector<8x128xf32>
    %95 = arith.mulf %93, %94 : vector<8x128xf32>
    %c0_35 = arith.constant 0 : index
    %c0_36 = arith.constant 0 : index
    %96 = vector.load %arg10[%c0_35, %c0_36] : memref<8x128xf32, #tpu.memory_space<vmem>>, vector<8x128xf32>
    %c0_37 = arith.constant 0 : index
    %c0_38 = arith.constant 0 : index
    %97 = vector.load %arg11[%c0_37, %c0_38] : memref<8x128xf32, #tpu.memory_space<vmem>>, vector<8x128xf32>
    %98 = vector.extract_strided_slice %55 {offsets = [0, 1], sizes = [8, 127], strides = [1, 1]} : vector<8x128xf32> to vector<8x127xf32>
    %99 = vector.extract_strided_slice %55 {offsets = [0, 0], sizes = [8, 1], strides = [1, 1]} : vector<8x128xf32> to vector<8x1xf32>
    %100 = tpu.concatenate %98, %99 in 1 : vector<8x127xf32>, vector<8x1xf32> -> vector<8x128xf32>
    %101 = vector.extract_strided_slice %55 {offsets = [0, 127], sizes = [8, 1], strides = [1, 1]} : vector<8x128xf32> to vector<8x1xf32>
    %102 = vector.extract_strided_slice %55 {offsets = [0, 0], sizes = [8, 127], strides = [1, 1]} : vector<8x128xf32> to vector<8x127xf32>
    %103 = tpu.concatenate %101, %102 in 1 : vector<8x1xf32>, vector<8x127xf32> -> vector<8x128xf32>
    %104 = tpu.iota {dimensions = array<i32: 1>} : vector<8x128xi32>
    %c2_i32_39 = arith.constant 2 : i32
    %c0_i32_40 = arith.constant 0 : i32
    %105 = arith.cmpi eq, %c2_i32_39, %c0_i32_40 : i32
    %c1_i32_41 = arith.constant 1 : i32
    %106 = arith.select %105, %c1_i32_41, %c2_i32_39 : i32
    %107 = vector.broadcast %106 : i32 to vector<8x128xi32>
    %108 = arith.remsi %104, %107 : vector<8x128xi32>
    %c0_i32_42 = arith.constant 0 : i32
    %109 = vector.broadcast %c0_i32_42 : i32 to vector<8x128xi32>
    %110 = arith.cmpi ne, %108, %109 : vector<8x128xi32>
    %c0_i32_43 = arith.constant 0 : i32
    %111 = vector.broadcast %c0_i32_43 : i32 to vector<8x128xi32>
    %112 = arith.cmpi slt, %108, %111 : vector<8x128xi32>
    %c0_i32_44 = arith.constant 0 : i32
    %113 = arith.cmpi slt, %106, %c0_i32_44 : i32
    %114 = vector.broadcast %113 : i1 to vector<8x128xi1>
    %115 = vector.broadcast %114 : vector<8x128xi1> to vector<8x128xi1>
    %116 = arith.xori %112, %115 : vector<8x128xi1>
    %117 = arith.andi %116, %110 : vector<8x128xi1>
    %118 = vector.broadcast %106 : i32 to vector<8x128xi32>
    %119 = arith.addi %108, %118 : vector<8x128xi32>
    %120 = arith.select %117, %119, %108 : vector<8x128xi1>, vector<8x128xi32>
    %c0_i32_45 = arith.constant 0 : i32
    %121 = vector.broadcast %c0_i32_45 : i32 to vector<8x128xi32>
    %122 = arith.cmpi eq, %120, %121 : vector<8x128xi32>
    %cst_46 = arith.constant 0.000000e+00 : f32
    %123 = vector.broadcast %cst_46 : f32 to vector<8x128xf32>
    %124 = arith.subf %123, %100 : vector<8x128xf32>
    %125 = arith.select %122, %124, %103 : vector<8x128xi1>, vector<8x128xf32>
    %126 = arith.mulf %55, %96 : vector<8x128xf32>
    %127 = arith.mulf %125, %97 : vector<8x128xf32>
    %128 = arith.addf %126, %127 : vector<8x128xf32>
    %129 = vector.extract_strided_slice %95 {offsets = [0, 0], sizes = [8, 32], strides = [1, 1]} : vector<8x128xf32> to vector<8x32xf32>
    %130 = vector.extract_strided_slice %95 {offsets = [0, 32], sizes = [8, 32], strides = [1, 1]} : vector<8x128xf32> to vector<8x32xf32>
    %131 = vector.extract_strided_slice %95 {offsets = [0, 64], sizes = [8, 32], strides = [1, 1]} : vector<8x128xf32> to vector<8x32xf32>
    %132 = vector.extract_strided_slice %95 {offsets = [0, 96], sizes = [8, 32], strides = [1, 1]} : vector<8x128xf32> to vector<8x32xf32>
    %133 = vector.shape_cast %129 : vector<8x32xf32> to vector<1x8x32xf32>
    %134 = vector.shape_cast %130 : vector<8x32xf32> to vector<1x8x32xf32>
    %135 = vector.shape_cast %131 : vector<8x32xf32> to vector<1x8x32xf32>
    %136 = vector.shape_cast %132 : vector<8x32xf32> to vector<1x8x32xf32>
    %137 = tpu.concatenate %133, %134, %135, %136 in 0 : vector<1x8x32xf32>, vector<1x8x32xf32>, vector<1x8x32xf32>, vector<1x8x32xf32> -> vector<4x8x32xf32>
    %138 = arith.truncf %137 : vector<4x8x32xf32> to vector<4x8x32xbf16>
    %139 = vector.extract_strided_slice %128 {offsets = [0, 0], sizes = [8, 32], strides = [1, 1]} : vector<8x128xf32> to vector<8x32xf32>
    %140 = vector.extract_strided_slice %128 {offsets = [0, 32], sizes = [8, 32], strides = [1, 1]} : vector<8x128xf32> to vector<8x32xf32>
    %141 = vector.extract_strided_slice %128 {offsets = [0, 64], sizes = [8, 32], strides = [1, 1]} : vector<8x128xf32> to vector<8x32xf32>
    %142 = vector.extract_strided_slice %128 {offsets = [0, 96], sizes = [8, 32], strides = [1, 1]} : vector<8x128xf32> to vector<8x32xf32>
    %143 = vector.shape_cast %139 : vector<8x32xf32> to vector<1x8x32xf32>
    %144 = vector.shape_cast %140 : vector<8x32xf32> to vector<1x8x32xf32>
    %145 = vector.shape_cast %141 : vector<8x32xf32> to vector<1x8x32xf32>
    %146 = vector.shape_cast %142 : vector<8x32xf32> to vector<1x8x32xf32>
    %147 = tpu.concatenate %143, %144, %145, %146 in 0 : vector<1x8x32xf32>, vector<1x8x32xf32>, vector<1x8x32xf32>, vector<1x8x32xf32> -> vector<4x8x32xf32>
    %148 = arith.truncf %147 : vector<4x8x32xf32> to vector<4x8x32xbf16>
    %149 = vector.extract_strided_slice %58 {offsets = [0, 0], sizes = [8, 32], strides = [1, 1]} : vector<8x128xf32> to vector<8x32xf32>
    %150 = vector.extract_strided_slice %58 {offsets = [0, 32], sizes = [8, 32], strides = [1, 1]} : vector<8x128xf32> to vector<8x32xf32>
    %151 = vector.extract_strided_slice %58 {offsets = [0, 64], sizes = [8, 32], strides = [1, 1]} : vector<8x128xf32> to vector<8x32xf32>
    %152 = vector.extract_strided_slice %58 {offsets = [0, 96], sizes = [8, 32], strides = [1, 1]} : vector<8x128xf32> to vector<8x32xf32>
    %153 = vector.shape_cast %149 : vector<8x32xf32> to vector<1x8x32xf32>
    %154 = vector.shape_cast %150 : vector<8x32xf32> to vector<1x8x32xf32>
    %155 = vector.shape_cast %151 : vector<8x32xf32> to vector<1x8x32xf32>
    %156 = vector.shape_cast %152 : vector<8x32xf32> to vector<1x8x32xf32>
    %157 = tpu.concatenate %153, %154, %155, %156 in 0 : vector<1x8x32xf32>, vector<1x8x32xf32>, vector<1x8x32xf32>, vector<1x8x32xf32> -> vector<4x8x32xf32>
    %158 = arith.truncf %157 : vector<4x8x32xf32> to vector<4x8x32xbf16>
    "tpu.trace_start"() <{level = 10 : i32, message = "hqd,hkd->hqk"}> : () -> ()
    %cst_47 = arith.constant dense<0.000000e+00> : vector<4x8x8xf32>
    %159 = tpu.matmul %138, %148, %cst_47 {dimension_numbers = #tpu.dot_dimension_numbers<[2], [2], [1], [1], [0, 0, 0, 1, 1, 1], [0], [0]>} : vector<4x8x32xbf16>, vector<4x8x32xbf16>, vector<4x8x8xf32> -> vector<4x8x8xf32>
    "tpu.trace_stop"() : () -> ()
    %160 = tpu.iota {dimensions = array<i32: 1>} : vector<4x8x8xi32>
    %161 = vector.broadcast %5 : i32 to vector<4x8x8xi32>
    %162 = arith.addi %161, %160 : vector<4x8x8xi32>
    %163 = tpu.iota {dimensions = array<i32: 2>} : vector<4x8x8xi32>
    %164 = arith.cmpi sgt, %163, %162 : vector<4x8x8xi32>
    %cst_48 = arith.constant -2.38197633E+38 : f32
    %165 = vector.broadcast %cst_48 : f32 to vector<4x8x8xf32>
    %166 = arith.select %164, %165, %159 : vector<4x8x8xi1>, vector<4x8x8xf32>
    %cst_49 = arith.constant dense<0xFF800000> : vector<4x8xf32>
    %167 = vector.multi_reduction <maximumf>, %166, %cst_49 [2] : vector<4x8x8xf32> to vector<4x8xf32>
    %168 = vector.shape_cast %167 : vector<4x8xf32> to vector<4x8x1xf32>
    %169 = vector.broadcast %168 : vector<4x8x1xf32> to vector<4x8x8xf32>
    %170 = arith.subf %166, %169 : vector<4x8x8xf32>
    %171 = math.exp %170 : vector<4x8x8xf32>
    %cst_50 = arith.constant dense<0.000000e+00> : vector<4x8xf32>
    %172 = vector.multi_reduction <add>, %171, %cst_50 [2] : vector<4x8x8xf32> to vector<4x8xf32>
    %173 = vector.shape_cast %172 : vector<4x8xf32> to vector<4x8x1xf32>
    %174 = tpu.reciprocal %173 {approx = true} : vector<4x8x1xf32> -> vector<4x8x1xf32>
    %175 = vector.broadcast %174 : vector<4x8x1xf32> to vector<4x8x8xf32>
    %176 = arith.mulf %171, %175 : vector<4x8x8xf32>
    %177 = arith.truncf %176 : vector<4x8x8xf32> to vector<4x8x8xbf16>
    "tpu.trace_start"() <{level = 10 : i32, message = "hqk,hkd->hqd"}> : () -> ()
    %cst_51 = arith.constant dense<0.000000e+00> : vector<4x8x32xf32>
    %178 = tpu.matmul %177, %158, %cst_51 {dimension_numbers = #tpu.dot_dimension_numbers<[2], [1], [1], [2], [0, 0, 0, 1, 1, 2], [0], [0]>} : vector<4x8x8xbf16>, vector<4x8x32xbf16>, vector<4x8x32xf32> -> vector<4x8x32xf32>
    "tpu.trace_stop"() : () -> ()
    %179 = arith.truncf %178 : vector<4x8x32xf32> to vector<4x8x32xbf16>
    %c0_52 = arith.constant 0 : index
    %c0_53 = arith.constant 0 : index
    %c0_54 = arith.constant 0 : index
    %180 = vector.load %arg9[%c0_52, %c0_53, %c0_54] : memref<4x32x128xbf16, #tpu.memory_space<vmem>>, vector<4x32x128xbf16>
    "tpu.trace_start"() <{level = 10 : i32, message = "hqd,hde->hqe"}> : () -> ()
    %cst_55 = arith.constant dense<0.000000e+00> : vector<4x8x128xf32>
    %181 = tpu.matmul %179, %180, %cst_55 {dimension_numbers = #tpu.dot_dimension_numbers<[2], [1], [1], [2], [0, 0, 0, 1, 1, 2], [0], [0]>} : vector<4x8x32xbf16>, vector<4x32x128xbf16>, vector<4x8x128xf32> -> vector<4x8x128xf32>
    "tpu.trace_stop"() : () -> ()
    %cst_56 = arith.constant dense<0.000000e+00> : vector<8x128xf32>
    %182 = vector.multi_reduction <add>, %181, %cst_56 [0] : vector<4x8x128xf32> to vector<8x128xf32>
    %183 = arith.addf %1, %182 : vector<8x128xf32>
    %c0_57 = arith.constant 0 : index
    %c0_58 = arith.constant 0 : index
    %184 = vector.load %arg12[%c0_57, %c0_58] : memref<1x128xf32, #tpu.memory_space<vmem>>, vector<1x128xf32>
    %c0_59 = arith.constant 0 : index
    %c0_60 = arith.constant 0 : index
    %185 = vector.load %arg13[%c0_59, %c0_60] : memref<1x128xf32, #tpu.memory_space<vmem>>, vector<1x128xf32>
    %cst_61 = arith.constant dense<0.000000e+00> : vector<8xf32>
    %186 = vector.multi_reduction <add>, %183, %cst_61 [1] : vector<8x128xf32> to vector<8xf32>
    %187 = vector.shape_cast %186 : vector<8xf32> to vector<8x1xf32>
    %cst_62 = arith.constant 1.280000e+02 : f32
    %188 = vector.broadcast %cst_62 : f32 to vector<8x1xf32>
    %189 = arith.divf %187, %188 : vector<8x1xf32>
    %190 = vector.broadcast %189 : vector<8x1xf32> to vector<8x128xf32>
    %191 = arith.subf %183, %190 : vector<8x128xf32>
    %192 = arith.mulf %191, %191 : vector<8x128xf32>
    %cst_63 = arith.constant dense<0.000000e+00> : vector<8xf32>
    %193 = vector.multi_reduction <add>, %192, %cst_63 [1] : vector<8x128xf32> to vector<8xf32>
    %194 = vector.shape_cast %193 : vector<8xf32> to vector<8x1xf32>
    %cst_64 = arith.constant 0.00787401571 : f32
    %195 = vector.broadcast %cst_64 : f32 to vector<8x1xf32>
    %196 = arith.mulf %194, %195 : vector<8x1xf32>
    %197 = math.sqrt %196 : vector<8x1xf32>
    %cst_65 = arith.constant 9.99999997E-7 : f32
    %198 = vector.broadcast %cst_65 : f32 to vector<8x1xf32>
    %199 = arith.addf %197, %198 : vector<8x1xf32>
    %200 = tpu.reciprocal %199 {approx = true} : vector<8x1xf32> -> vector<8x1xf32>
    %201 = vector.broadcast %200 : vector<8x1xf32> to vector<8x128xf32>
    %202 = arith.mulf %191, %201 : vector<8x128xf32>
    %203 = vector.broadcast %184 : vector<1x128xf32> to vector<8x128xf32>
    %204 = arith.mulf %203, %202 : vector<8x128xf32>
    %205 = vector.broadcast %185 : vector<1x128xf32> to vector<8x128xf32>
    %206 = arith.addf %204, %205 : vector<8x128xf32>
    %207 = arith.truncf %206 : vector<8x128xf32> to vector<8x128xbf16>
    %c0_66 = arith.constant 0 : index
    %c0_67 = arith.constant 0 : index
    %208 = vector.load %arg14[%c0_66, %c0_67] : memref<128x512xbf16, #tpu.memory_space<vmem>>, vector<128x512xbf16>
    %cst_68 = arith.constant dense<0.000000e+00> : vector<8x512xf32>
    %209 = tpu.matmul %207, %208, %cst_68 {dimension_numbers = #tpu.dot_dimension_numbers<[1], [0], [0], [1], [0, 0, 1, 1], [], []>} : vector<8x128xbf16>, vector<128x512xbf16>, vector<8x512xf32> -> vector<8x512xf32>
    %c0_69 = arith.constant 0 : index
    %c0_70 = arith.constant 0 : index
    %210 = vector.load %arg15[%c0_69, %c0_70] : memref<1x512xf32, #tpu.memory_space<vmem>>, vector<1x512xf32>
    %211 = vector.broadcast %210 : vector<1x512xf32> to vector<8x512xf32>
    %212 = arith.addf %209, %211 : vector<8x512xf32>
    %cst_71 = arith.constant 0.000000e+00 : f32
    %213 = vector.broadcast %cst_71 : f32 to vector<8x512xf32>
    %214 = arith.maximumf %212, %213 : vector<8x512xf32>
    %215 = arith.truncf %214 : vector<8x512xf32> to vector<8x512xbf16>
    %c0_72 = arith.constant 0 : index
    %c0_73 = arith.constant 0 : index
    %216 = vector.load %arg16[%c0_72, %c0_73] : memref<512x128xbf16, #tpu.memory_space<vmem>>, vector<512x128xbf16>
    %cst_74 = arith.constant dense<0.000000e+00> : vector<8x128xf32>
    %217 = tpu.matmul %215, %216, %cst_74 {dimension_numbers = #tpu.dot_dimension_numbers<[1], [0], [0], [1], [0, 0, 1, 1], [], []>} : vector<8x512xbf16>, vector<512x128xbf16>, vector<8x128xf32> -> vector<8x128xf32>
    %c0_75 = arith.constant 0 : index
    %c0_76 = arith.constant 0 : index
    %218 = vector.load %arg17[%c0_75, %c0_76] : memref<1x128xf32, #tpu.memory_space<vmem>>, vector<1x128xf32>
    %219 = vector.broadcast %218 : vector<1x128xf32> to vector<8x128xf32>
    %220 = arith.addf %217, %219 : vector<8x128xf32>
    %221 = arith.addf %183, %220 : vector<8x128xf32>
    %c0_77 = arith.constant 0 : index
    %c0_78 = arith.constant 0 : index
    %c0_79 = arith.constant 0 : index
    %222 = vector.load %arg18[%c0_77, %c0_78, %c0_79] : memref<1x8x128xf32, #tpu.memory_space<vmem>>, vector<1x8x128xf32>
    %223 = vector.shape_cast %222 : vector<1x8x128xf32> to vector<8x128xf32>
    %224 = vector.shape_cast %221 : vector<8x128xf32> to vector<1x8x128xf32>
    tpu.vector_store %arg18[%c0_77, %c0_78, %c0_79], %224 {strides = array<i32>} : memref<1x8x128xf32, #tpu.memory_space<vmem>>, vector<1x8x128xf32>,
    return
  }
  func.func @transform_0(%arg0: i32, %arg1: i32) -> (i32, i32, i32) {
    %c0_i32 = arith.constant 0 : i32
    %c0_i32_0 = arith.constant 0 : i32
    return %arg0, %arg1, %c0_i32 : i32, i32, i32
  }
  func.func @transform_1(%arg0: i32, %arg1: i32) -> (i32, i32, i32) {
    %c0_i32 = arith.constant 0 : i32
    %c0_i32_0 = arith.constant 0 : i32
    %c0_i32_1 = arith.constant 0 : i32
    return %arg0, %c0_i32, %c0_i32_0 : i32, i32, i32
  }
  func.func @transform_2(%arg0: i32, %arg1: i32) -> (i32, i32) {
    %c0_i32 = arith.constant 0 : i32
    %c0_i32_0 = arith.constant 0 : i32
    %c0_i32_1 = arith.constant 0 : i32
    return %c0_i32, %c0_i32_0 : i32, i32
  }
  func.func @transform_3(%arg0: i32, %arg1: i32) -> (i32, i32) {
    %c0_i32 = arith.constant 0 : i32
    %c0_i32_0 = arith.constant 0 : i32
    %c0_i32_1 = arith.constant 0 : i32
    return %c0_i32, %c0_i32_0 : i32, i32
  }
  func.func @transform_4(%arg0: i32, %arg1: i32) -> (i32, i32) {
    %c0_i32 = arith.constant 0 : i32
    %c0_i32_0 = arith.constant 0 : i32
    %c0_i32_1 = arith.constant 0 : i32
    return %c0_i32, %c0_i32_0 : i32, i32
  }
  func.func @transform_5(%arg0: i32, %arg1: i32) -> (i32, i32) {
    %c0_i32 = arith.constant 0 : i32
    %c0_i32_0 = arith.constant 0 : i32
    %c0_i32_1 = arith.constant 0 : i32
    return %c0_i32, %c0_i32_0 : i32, i32
  }
  func.func @transform_6(%arg0: i32, %arg1: i32) -> (i32, i32) {
    %c0_i32 = arith.constant 0 : i32
    %c0_i32_0 = arith.constant 0 : i32
    %c0_i32_1 = arith.constant 0 : i32
    return %c0_i32, %c0_i32_0 : i32, i32
  }
  func.func @transform_7(%arg0: i32, %arg1: i32) -> (i32, i32, i32) {
    %c0_i32 = arith.constant 0 : i32
    %c0_i32_0 = arith.constant 0 : i32
    %c0_i32_1 = arith.constant 0 : i32
    %c0_i32_2 = arith.constant 0 : i32
    return %c0_i32, %c0_i32_0, %c0_i32_1 : i32, i32, i32
  }
  func.func @transform_8(%arg0: i32, %arg1: i32) -> (i32, i32) {
    %c0_i32 = arith.constant 0 : i32
    %c0_i32_0 = arith.constant 0 : i32
    %c0_i32_1 = arith.constant 0 : i32
    return %c0_i32, %c0_i32_0 : i32, i32
  }
  func.func @transform_9(%arg0: i32, %arg1: i32) -> (i32, i32) {
    %c0_i32 = arith.constant 0 : i32
    %c0_i32_0 = arith.constant 0 : i32
    %c0_i32_1 = arith.constant 0 : i32
    return %c0_i32, %c0_i32_0 : i32, i32
  }
  func.func @transform_10(%arg0: i32, %arg1: i32) -> (i32, i32) {
    %c0_i32 = arith.constant 0 : i32
    %c0_i32_0 = arith.constant 0 : i32
    %c0_i32_1 = arith.constant 0 : i32
    return %c0_i32, %c0_i32_0 : i32, i32
  }
  func.func @transform_11(%arg0: i32, %arg1: i32) -> (i32, i32) {
    %c0_i32 = arith.constant 0 : i32
    %c0_i32_0 = arith.constant 0 : i32
    %c0_i32_1 = arith.constant 0 : i32
    return %c0_i32, %c0_i32_0 : i32, i32
  }
  func.func @transform_12(%arg0: i32, %arg1: i32) -> (i32, i32) {
    %c0_i32 = arith.constant 0 : i32
    %c0_i32_0 = arith.constant 0 : i32
    %c0_i32_1 = arith.constant 0 : i32
    return %c0_i32, %c0_i32_0 : i32, i32
  }
  func.func @transform_13(%arg0: i32, %arg1: i32) -> (i32, i32) {
    %c0_i32 = arith.constant 0 : i32
    %c0_i32_0 = arith.constant 0 : i32
    %c0_i32_1 = arith.constant 0 : i32
    return %c0_i32, %c0_i32_0 : i32, i32
  }
  func.func @transform_14(%arg0: i32, %arg1: i32) -> (i32, i32) {
    %c0_i32 = arith.constant 0 : i32
    %c0_i32_0 = arith.constant 0 : i32
    %c0_i32_1 = arith.constant 0 : i32
    return %c0_i32, %c0_i32_0 : i32, i32
  }
  func.func @transform_15(%arg0: i32, %arg1: i32) -> (i32, i32) {
    %c0_i32 = arith.constant 0 : i32
    %c0_i32_0 = arith.constant 0 : i32
    %c0_i32_1 = arith.constant 0 : i32
    return %c0_i32, %c0_i32_0 : i32, i32
  }
  func.func @transform_16(%arg0: i32, %arg1: i32) -> (i32, i32, i32) {
    %c0_i32 = arith.constant 0 : i32
    %c0_i32_0 = arith.constant 0 : i32
    return %arg0, %arg1, %c0_i32 : i32, i32, i32
  }
}

</mosaic_0001>

<bundles_post_ra>
// kernel: tpu_custom_call.1
= control target key start
LH: loop header
LB: loop body
LE: loop exit
PB: predicated region body
PF: predicated region fallthrough
CT: control target
= control target key end

     0   :  { %6 = vsyncpa [#allocation3], 0  ;;  %s128_s0 = inlined_call_operand.hbm [shape: f32[8,128], index: 0, kind: input, shape index: {}]   ;;  %s129_s1 = inlined_call_operand.hbm [shape: f32[8,128], index: 1, kind: output, shape index: {}]  }
   0x1   :  { %7 = vsyncpa [#allocation4], 0  ;;  %s91_s6 = smov [#allocation2]   ;;  %s43_s10 = scalar_lea.hbm %s128_s0, 128 }
   0x2   :  { %s14_s7 = sshll.u32 %s91_s6, 4  ;;  %p44_p0 = scmp.ne.s32.totalorder %s128_s0, %s43_s10  ;;  %s15_s7 = int_to_ptr.vmem [resolvable:$true] %s14_s7 }
   0x3   :  { %p47_p1 = scmp.lt.u32.totalorder %s43_s10, %s128_s0 }
   0x5   :  { %p49_p2 = pnand %p47_p1, %p44_p0 }
   0x7   :  { %52 = shalt.err (!%p49_p2)
}
   0x8   :  { %s53_s15 = scalar_lea.vmem %s15_s7, 128  ;;  %p58_p4 = scmp.lt.s32.totalorder %s15_s7, %s15_s7 }
   0x9   :  { %p54_p3 = scmp.ne.s32.totalorder %s15_s7, %s53_s15  ;;  %p59_p5 = scmp.lt.s32.totalorder %s53_s15, %s53_s15 }
   0xb   :  { %p60_p6 = por %p59_p5, %p58_p4 }
   0xd   :  { %p61_p7 = pnand %p60_p6, %p54_p3 }
   0xf   :  { %64 = shalt.err (!%p61_p7)
}
  0x10   :  { %17 = dma.hbm_to_vmem [thread:$0]  %s128_s0, 128, %s15_s7, [#allocation3]  }
  0x11   :  { %87 = dma.done.wait [#allocation3], 128  }
  0x12   :  { %88 = vsyncadd [#allocation3], 4294967168  ;;  %v21_v0 = vld [vmem:[#allocation2] sm:$0xff]  ;;  %s92_s18 = smov 1   ;;  %s93_s19 = smov [#allocation5]  }
  0x13   :  { %22 = vrot.lane.b32.xlu0 %v21_v0, %s92_s18  ;;  %s31_s20 = sshll.u32 %s93_s19, 4  ;;  %s32_s20 = int_to_ptr.vmem [resolvable:$true] %s31_s20 }
  0x14   :  { %s65_s21 = scalar_lea.vmem %s32_s20, 128  ;;  %p70_p9 = scmp.lt.s32.totalorder %s32_s20, %s32_s20 }
  0x15   :  { %p66_p8 = scmp.ne.s32.totalorder %s32_s20, %s65_s21  ;;  %p71_p10 = scmp.lt.s32.totalorder %s65_s21, %s65_s21 }
  0x17   :  { %p72_p11 = por %p71_p10, %p70_p9 }
  0x19   :  { %p73_p12 = pnand %p72_p11, %p66_p8 }
  0x85   :  { %v23_v1 = vpop.permute.xlu0 %22 }
  0x86   :  { %24 = vst [vmem:[#allocation5] sm:$0xff] %v23_v1 }
  0x87   :  { %76 = shalt.err (!%p73_p12)
}
  0x88   :  { %s77_s0 = scalar_lea.hbm %s129_s1, 128 }
  0x89   :  { %p78_p13 = scmp.ne.s32.totalorder %s129_s1, %s77_s0  ;;  %p81_p0 = scmp.lt.u32.totalorder %s77_s0, %s129_s1 }
  0x8b   :  { %p83_p1 = pnand %p81_p0, %p78_p13 }
  0x8d   :  { %86 = shalt.err (!%p83_p1)
}
  0x8e   :  { %34 = dma.vmem_to_hbm [thread:$0]  %s32_s20, 128, %s129_s1, [#allocation4]  }
  0x8f   :  { %89 = dma.done.wait [#allocation4], 128  }
  0x90   :  { %90 = vsyncadd [#allocation4], 4294967168 }
  0x91   :  { %38 = vsyncpa [#allocation3], 1 }
  0x92   :  { %39 = vsyncpa [#allocation4], 1 }

// kernel: tpu_custom_call.1
= control target key start
LH: loop header
LB: loop body
LE: loop exit
PB: predicated region body
PF: predicated region fallthrough
CT: control target
= control target key end

     0   :  { %s4349_s0 = inlined_call_operand.hbm [shape: f32[2,8,128], index: 0, kind: input, shape index: {}]   ;;  %s4350_s1 = inlined_call_operand.hbm [shape: f32[2,8,128], index: 1, kind: input, shape index: {}]   ;;  %s4351_s2 = inlined_call_operand.vmem [shape: f32[1,128], index: 2, kind: input, shape index: {}]   ;;  %s4352_s3 = inlined_call_operand.vmem [shape: f32[1,128], index: 3, kind: input, shape index: {}]   ;;  %s4353_s4 = inlined_call_operand.hbm [shape: bf16[128,128], index: 4, kind: input, shape index: {}]   ;;  %s4354_s5 = inlined_call_operand.hbm [shape: bf16[128,128], index: 5, kind: input, shape index: {}]   ;;  %s4355_s6 = inlined_call_operand.hbm [shape: bf16[128,128], index: 6, kind: input, shape index: {}]   ;;  %s4356_s7 = inlined_call_operand.hbm [shape: bf16[4,32,128], index: 7, kind: input, shape index: {}]   ;;  %s4357_s8 = inlined_call_operand.vmem [shape: f32[8,128], index: 8, kind: input, shape index: {}]   ;;  %s4358_s9 = inlined_call_operand.vmem [shape: f32[8,128], index: 9, kind: input, shape index: {}]   ;;  %s4359_s10 = inlined_call_operand.vmem [shape: f32[1,128], index: 10, kind: input, shape index: {}]   ;;  %s4360_s11 = inlined_call_operand.vmem [shape: f32[1,128], index: 11, kind: input, shape index: {}]   ;;  %s4361_s12 = inlined_call_operand.hbm [shape: bf16[128,512], index: 12, kind: input, shape index: {}]   ;;  %s4362_s13 = inlined_call_operand.vmem [shape: f32[1,512], index: 13, kind: input, shape index: {}]   ;;  %s4363_s14 = inlined_call_operand.hbm [shape: bf16[512,128], index: 14, kind: input, shape index: {}]   ;;  %s4364_s15 = inlined_call_operand.vmem [shape: f32[1,128], index: 15, kind: input, shape index: {}]   ;;  %s4365_s16 = inlined_call_operand.hbm [shape: f32[2,8,128], index: 16, kind: output, shape index: {}]  }
   0x1   :  { %4373 = sst [smem:[#allocation25_spill]] %s4349_s0 }
   0x2   :  { %4374 = sst [smem:[#allocation26_spill]] %s4352_s3 }
   0x3   :  { %4375 = sst [smem:[#allocation27_spill]] %s4353_s4 }
   0x4   :  { %4376 = sst [smem:[#allocation28_spill]] %s4354_s5 }
   0x5   :  { %4377 = sst [smem:[#allocation29_spill]] %s4355_s6 }
   0x6   :  { %4378 = sst [smem:[#allocation30_spill]] %s4356_s7 }
   0x7   :  { %4379 = sst [smem:[#allocation31_spill]] %s4357_s8 }
   0x8   :  { %4380 = sst [smem:[#allocation32_spill]] %s4358_s9 }
   0x9   :  { %4381 = sst [smem:[#allocation33_spill]] %s4359_s10 }
   0xa   :  { %4382 = sst [smem:[#allocation34_spill]] %s4360_s11 }
   0xb   :  { %4383 = sst [smem:[#allocation35_spill]] %s4361_s12 }
   0xc   :  { %4384 = sst [smem:[#allocation36_spill]] %s4362_s13 }
   0xd   :  { %4385 = sst [smem:[#allocation37_spill]] %s4363_s14 }
   0xe   :  { %4386 = sst [smem:[#allocation38_spill]] %s4364_s15 }
   0xf   :  { %4387 = sst [smem:[#allocation39_spill]] %s4365_s16 }
  0x10   :  { %21 = vsyncpa [#allocation3], 0 }
  0x11   :  { %23 = vsyncpa [#allocation3 + $0x1], 0 }
  0x12   :  { %24 = vsyncpa [#allocation6], 0 }
  0x13   :  { %26 = vsyncpa [#allocation6 + $0x1], 0 }
  0x14   :  { %27 = vsyncpa [#allocation9], 0 }
  0x15   :  { %28 = vsyncpa [#allocation12], 0 }
  0x16   :  { %29 = vsyncpa [#allocation15], 0 }
  0x17   :  { %30 = vsyncpa [#allocation4], 0 }
  0x18   :  { %32 = vsyncpa [#allocation4 + $0x1], 0  ;;  %s3773_s21 = smov 0   ;;  %s3775_s22 = smov 0  }
  0x19   :  { %s3777_s23 = smov 0   ;;  %s3779_s24 = smov 0  }
  0x1a   :  { %s3781_s25 = smov 0   ;;  %s3783_s26 = smov 0  }
  0x1b LB: > { %4388 = sst [smem:[#allocation24_spill]] %s3657_s24  ;;  %s3804_s27 = sadd.s32 4294967295, %s3665_s26   ;;  %s3665_s26 = sphi %s3783_s26, %s38_s26   ;;  %s3661_s25 = sphi %s3781_s25, %s4432_s25   ;;  %s3657_s24 = sphi %s3779_s24, %s4431_s24   ;;  %s3653_s23 = sphi %s3777_s23, %s4430_s23   ;;  %s3649_s22 = sphi %s3775_s22, %s4429_s22   ;;  %s3645_s21 = sphi %s3773_s21, %s4428_s21  }
  0x1c   : > { %p2676_p0 = scmp.ge.s32.totalorder %s3665_s26, 1  ;;  %p4368_p1 = scmp.eq.s32.totalorder %s3804_s27, 0 }
  0x1d   : > { %p431_p2 = scmp.lt.s32.totalorder %s3665_s26, 3  ;;  %s3667_s29 = smov [#allocation7]  }
  0x1e   : > { %s449_s30 = sshll.u32 %s3667_s29, 4  ;;  %s3668_s17 = smov [#allocation8]   ;;  %s3813_s30 = int_to_ptr.vmem [resolvable:$true] %s449_s30 }
  0x1f   : > { %p3809_p3 = pnand %p2676_p0, %p431_p2  ;;  %s462_s18 = sshll.u32 %s3668_s17, 4  ;;  %s3824_s18 = int_to_ptr.vmem [resolvable:$true] %s462_s18 }
  0x20   : > { %s3669_s19 = smov [#allocation11]   ;;  %s4391_s4 = sld [smem:[#allocation27_spill]] }
  0x21   : > { %s4389_s28 = scalar_select %p3809_p3, 1, 0 }
  0x22   : > { %p3084_p4 = pneg %p3809_p3  ;;  %s3826_s20 = sshll.u32 %s3669_s19, 4  ;;  %s489_s20 = int_to_ptr.vmem [resolvable:$true] %s3826_s20 }
  0x24   : > { %p3820_p6 = pnand %p3084_p4, %p4368_p1 }
  0x26   : > { %s3335_s15 = scalar_lea.hbm %s4391_s4, 1024  ;;  %p3836_p8 = pneg %p3820_p6 }
  0x27   : > { %p3336_p7 = scmp.ne.s32.totalorder %s4391_s4, %s3335_s15  ;;  %p3342_p11 = scmp.lt.u32.totalorder %s3335_s15, %s4391_s4 }
  0x29   : > { %p3338_p9 = pnand %p3836_p8, %p3336_p7 }
  0x2b   : > { %p3339_p10 = pneg %p3338_p9 }
  0x2d   : > { %p3344_p12 = pnand %p3342_p11, %p3339_p10 }
  0x2f   : > { %3347 = shalt.err (!%p3344_p12)
}
  0x30   : > { %s3348_s13 = scalar_lea.vmem %s3813_s30, 1024  ;;  %p3356_p4 = scmp.lt.s32.totalorder %s3813_s30, %s3813_s30 }
  0x31   : > { %p3349_p13 = scmp.ne.s32.totalorder %s3813_s30, %s3348_s13  ;;  %p3357_p5 = scmp.lt.s32.totalorder %s3348_s13, %s3348_s13 }
  0x33   : > { %p3351_p0 = pnand %p3349_p13, %p3836_p8  ;;  %p3358_p7 = por %p3357_p5, %p3356_p4 }
  0x35   : > { %p3352_p2 = pneg %p3351_p0 }
  0x37   : > { %p3359_p9 = pnand %p3358_p7, %p3352_p2 }
  0x39   : > { %3362 = shalt.err (!%p3359_p9)
}
  0x3a   : > { %s4370_s16 = smov 64   ;;  %s3671_s15 = smov 4  }
  0x3b   : > { %3087 = dma.hbm_to_vmem [thread:$0]  (!%p3820_p6), %s4391_s4, 1024, %s3813_s30, [#allocation6], %s4370_s16, %s4370_s16, %s3671_s15  }
  0x3c   : > { %s4393_s5 = sld [smem:[#allocation28_spill]] }
  0x42   : > { %s3363_s13 = scalar_lea.hbm %s4393_s5, 1024 }
  0x43   : > { %p3364_p5 = scmp.ne.s32.totalorder %s4393_s5, %s3363_s13  ;;  %p3370_p12 = scmp.lt.u32.totalorder %s3363_s13, %s4393_s5 }
  0x45   : > { %p3366_p10 = pnand %p3364_p5, %p3836_p8 }
  0x47   : > { %p3367_p11 = pneg %p3366_p10 }
  0x49   : > { %p3372_p13 = pnand %p3370_p12, %p3367_p11 }
  0x4b   : > { %3375 = shalt.err (!%p3372_p13)
}
  0x4c   : > { %s3376_s30 = scalar_lea.vmem %s3824_s18, 1024  ;;  %p3384_p7 = scmp.lt.s32.totalorder %s3824_s18, %s3824_s18 }
  0x4d   : > { %p3377_p0 = scmp.ne.s32.totalorder %s3824_s18, %s3376_s30  ;;  %p3385_p9 = scmp.lt.s32.totalorder %s3376_s30, %s3376_s30 }
  0x4f   : > { %p3379_p2 = pnand %p3377_p0, %p3836_p8  ;;  %p3386_p5 = por %p3385_p9, %p3384_p7 }
  0x51   : > { %p3380_p4 = pneg %p3379_p2 }
  0x53   : > { %p3387_p10 = pnand %p3386_p5, %p3380_p4 }
  0x55   : > { %3390 = shalt.err (!%p3387_p10)
}
  0x56   : > { %3090 = dma.hbm_to_vmem [thread:$0]  (!%p3820_p6), %s4393_s5, 1024, %s3824_s18, [#allocation9], %s4370_s16, %s4370_s16, %s3671_s15  }
  0x57   : > { %s4394_s7 = sld [smem:[#allocation30_spill]] }
  0x5d   : > { %s3391_s24 = scalar_lea.hbm %s4394_s7, 1024 }
  0x5e   : > { %p3392_p11 = scmp.ne.s32.totalorder %s4394_s7, %s3391_s24  ;;  %p3398_p0 = scmp.lt.u32.totalorder %s3391_s24, %s4394_s7 }
  0x60   : > { %p3394_p12 = pnand %p3392_p11, %p3836_p8 }
  0x62   : > { %p3395_p13 = pneg %p3394_p12 }
  0x64   : > { %p3400_p2 = pnand %p3398_p0, %p3395_p13 }
  0x66   : > { %3403 = shalt.err (!%p3400_p2)
}
  0x67   : > { %s3404_s30 = scalar_lea.vmem %s489_s20, 1024  ;;  %p3412_p5 = scmp.lt.s32.totalorder %s489_s20, %s489_s20 }
  0x68   : > { %p3405_p4 = scmp.ne.s32.totalorder %s489_s20, %s3404_s30  ;;  %p3413_p10 = scmp.lt.s32.totalorder %s3404_s30, %s3404_s30 }
  0x6a   : > { %p3407_p7 = pnand %p3405_p4, %p3836_p8  ;;  %p3414_p1 = por %p3413_p10, %p3412_p5 }
  0x6c   : > { %p3408_p9 = pneg %p3407_p7 }
  0x6e   : > { %p3415_p3 = pnand %p3414_p1, %p3408_p9 }
  0x70   : > { %3418 = shalt.err (!%p3415_p3)
}
  0x71   : > { %3096 = dma.hbm_to_vmem [thread:$0]  (!%p3820_p6), %s4394_s7, 1024, %s489_s20, [#allocation12], %s4370_s16, %s4370_s16, %s3671_s15  }
  0x72   : > { %s3672_s8 = smov [#allocation10]   ;;  %s3673_s10 = smov [#allocation13]  }
  0x73   : > { %s475_s9 = sshll.u32 %s3672_s8, 4  ;;  %s513_s24 = sshll.u32 %s3673_s10, 4  ;;  %s476_s9 = int_to_ptr.vmem [resolvable:$true] %s475_s9  ;;  %s514_s24 = int_to_ptr.vmem [resolvable:$true] %s513_s24 }
  0x74   : > { %s4395_s6 = sld [smem:[#allocation29_spill]] }
  0x7a   : > { %s3419_s19 = scalar_lea.hbm %s4395_s6, 1024 }
  0x7b   : > { %p3420_p1 = scmp.ne.s32.totalorder %s4395_s6, %s3419_s19  ;;  %p3426_p12 = scmp.lt.u32.totalorder %s3419_s19, %s4395_s6 }
  0x7d   : > { %p3422_p3 = pnand %p3420_p1, %p3836_p8 }
  0x7f   : > { %p3423_p11 = pneg %p3422_p3 }
  0x81   : > { %p3428_p13 = pnand %p3426_p12, %p3423_p11 }
  0x83   : > { %3431 = shalt.err (!%p3428_p13)
}
  0x84   : > { %s3432_s20 = scalar_lea.vmem %s476_s9, 1024  ;;  %p3440_p7 = scmp.lt.s32.totalorder %s476_s9, %s476_s9 }
  0x85   : > { %p3433_p0 = scmp.ne.s32.totalorder %s476_s9, %s3432_s20  ;;  %p3441_p9 = scmp.lt.s32.totalorder %s3432_s20, %s3432_s20 }
  0x87   : > { %p3435_p2 = pnand %p3433_p0, %p3836_p8  ;;  %p3442_p5 = por %p3441_p9, %p3440_p7 }
  0x89   : > { %p3436_p4 = pneg %p3435_p2 }
  0x8b   : > { %p3443_p10 = pnand %p3442_p5, %p3436_p4 }
  0x8d   : > { %3446 = shalt.err (!%p3443_p10)
}
  0x8e   : > { %3093 = dma.hbm_to_vmem [thread:$0]  (!%p3820_p6), %s4395_s6, 1024, %s476_s9, [#allocation9], %s4370_s16, %s4370_s16, %s3671_s15  }
  0x8f   : > { %s4396_s12 = sld [smem:[#allocation35_spill]] }
  0x95   : > { %s3447_s29 = scalar_lea.hbm %s4396_s12, 4096 }
  0x96   : > { %p3448_p1 = scmp.ne.s32.totalorder %s4396_s12, %s3447_s29  ;;  %p3454_p12 = scmp.lt.u32.totalorder %s3447_s29, %s4396_s12 }
  0x98   : > { %p3450_p3 = pnand %p3448_p1, %p3836_p8 }
  0x9a   : > { %p3451_p11 = pneg %p3450_p3 }
  0x9c   : > { %p3456_p13 = pnand %p3454_p12, %p3451_p11 }
  0x9e   : > { %3459 = shalt.err (!%p3456_p13)
}
  0x9f   : > { %s3460_s18 = scalar_lea.vmem %s514_s24, 4096  ;;  %p3468_p7 = scmp.lt.s32.totalorder %s514_s24, %s514_s24 }
  0xa0   : > { %p3461_p0 = scmp.ne.s32.totalorder %s514_s24, %s3460_s18  ;;  %p3469_p9 = scmp.lt.s32.totalorder %s3460_s18, %s3460_s18 }
  0xa2   : > { %p3463_p2 = pnand %p3461_p0, %p3836_p8  ;;  %p3470_p5 = por %p3469_p9, %p3468_p7 }
  0xa4   : > { %p3464_p4 = pneg %p3463_p2 }
  0xa6   : > { %p3471_p10 = pnand %p3470_p5, %p3464_p4 }
  0xa8   : > { %3474 = shalt.err (!%p3471_p10)
}
  0xa9   : > { %s3674_s9 = smov 256   ;;  %s3675_s20 = smov 16  }
  0xaa   : > { %3099 = dma.hbm_to_vmem [thread:$0]  (!%p3820_p6), %s4396_s12, 4096, %s514_s24, [#allocation12], %s3674_s9, %s3674_s9, %s3675_s20  }
  0xab   : > { %s3676_s8 = smov [#allocation14]   ;;  %s4397_s14 = sld [smem:[#allocation37_spill]] }
  0xac   : > { %s529_s10 = sshll.u32 %s3676_s8, 4  ;;  %s530_s10 = int_to_ptr.vmem [resolvable:$true] %s529_s10 }
  0xb1   : > { %s3475_s19 = scalar_lea.hbm %s4397_s14, 4096 }
  0xb2   : > { %p3476_p1 = scmp.ne.s32.totalorder %s4397_s14, %s3475_s19  ;;  %p3482_p12 = scmp.lt.u32.totalorder %s3475_s19, %s4397_s14 }
  0xb4   : > { %p3478_p3 = pnand %p3476_p1, %p3836_p8 }
  0xb6   : > { %p3479_p11 = pneg %p3478_p3 }
  0xb8   : > { %p3484_p13 = pnand %p3482_p12, %p3479_p11 }
  0xba   : > { %3487 = shalt.err (!%p3484_p13)
}
  0xbb   : > { %s3488_s24 = scalar_lea.vmem %s530_s10, 4096  ;;  %p3496_p7 = scmp.lt.s32.totalorder %s530_s10, %s530_s10 }
  0xbc   : > { %p3489_p0 = scmp.ne.s32.totalorder %s530_s10, %s3488_s24  ;;  %p3497_p9 = scmp.lt.s32.totalorder %s3488_s24, %s3488_s24 }
  0xbe   : > { %p3491_p2 = pnand %p3489_p0, %p3836_p8  ;;  %p3498_p5 = por %p3497_p9, %p3496_p7 }
  0xc0   : > { %p3492_p4 = pneg %p3491_p2 }
  0xc2   : > { %p3499_p10 = pnand %p3498_p5, %p3492_p4 }
  0xc4   : > { %3502 = shalt.err (!%p3499_p10)
}
  0xc5   : > { %s4398_s9 = smov 64   ;;  %s2675_s11 = sadd.s32 4294967294, %s3665_s26  }
  0xc6   : > { %3102 = dma.hbm_to_vmem [thread:$0]  (!%p3820_p6), %s4397_s14, 4096, %s530_s10, [#allocation15], %s4398_s9, %s4398_s9, %s3671_s15  }
  0xc7   : > { %s50_s0 = sadd.s32 1, %s3661_s25  ;;  %s59_s4 = sadd.s32 1, %s3653_s23 }
  0xc8   : > { %p52_p8 = scmp.ge.s32.totalorder %s50_s0, 2  ;;  %p66_p1 = scmp.ne.s32.totalorder %s3653_s23, %s3649_s22 }
  0xc9   : > { %p67_p3 = scmp.eq.s32.totalorder %s3665_s26, 0  ;;  %p72_p12 = scmp.ne.s32.totalorder %s3649_s22, %s3645_s21 }
  0xca   : > { %s4434_s0 = smov (%p52_p8, %s50_s0), 0  ;;  %p418_p6 = scmp.eq.s32.totalorder %s3804_s27, 1 }
  0xcb   : > { %p3976_p11 = por %p67_p3, %p66_p1  ;;  %s54_s15 = ssub.s32 %s3661_s25, %s4434_s0 }
  0xcc   : > { %p57_p13 = scmp.eq.s32.totalorder %s54_s15, 0  ;;  %p4400_p0 = scmp.eq.s32.totalorder %s3804_s27, 0 }
  0xcd   : > { %p3991_p4 = por %p418_p6, %p66_p1  ;;  %p424_p7 = scmp.eq.s32.totalorder %s2675_s11, 1 }
  0xce   : > { %p3987_p2 = por %p4400_p0, %p72_p12  ;;  %p3120_p5 = scmp.lt.s32.totalorder %s3665_s26, 2 }
  0xcf   : > { %s4402_s10 = scalar_select %p3991_p4, 1, 0 }
  0xd0   : > { %s4401_s8 = scalar_select %p3987_p2, 1, 0 }
  0xd1   : > { %s3996_s29 = scalar_select %p57_p13, %s3653_s23, %s59_s4  }
  0xd2   : > { %p3998_p9 = por %p424_p7, %p72_p12  ;;  %s546_s19 = sand.u32 1, %s3653_s23  }
  0xd3   : > { %s2685_s13 = sshll.u32 %s3661_s25, 7  ;;  %s4005_s30 = sshll.u32 %s546_s19, 3 }
  0xd4   : > { %s4403_s17 = scalar_select %p3998_p9, 1, 0 }
  0xd5   : > { %s4404_s9 = sld [smem:[#allocation25_spill]]  ;;  %s550_s20 = scalar_lea.vmem [#allocation2], %s4005_s30 }
  0xd6   : > { %s558_s11 = sshll.u32 %s550_s20, 4  ;;  %p4015_p10 = pnand %p3120_p5, %p3976_p11  ;;  %s4019_s11 = int_to_ptr.vmem [resolvable:$true] %s558_s11 }
  0xd7   : > { %s4024_s24 = scalar_lea.hbm %s4350_s1, %s2685_s13  ;;  %s547_s5 = scalar_lea.sflag [#allocation3], %s546_s19 }
  0xd8   : > { %p3505_p1 = pneg %p4015_p10 }
  0xdb   : > { %s4010_s16 = scalar_lea.hbm %s4404_s9, %s2685_s13  ;;  %s3508_s7 = scalar_lea.hbm %s4404_s9, 256 }
  0xdc   : > { %s3503_s6 = scalar_lea.hbm %s4010_s16, 128  ;;  %p3509_p12 = scmp.lt.u32.totalorder %s4010_s16, %s4404_s9 }
  0xdd   : > { %p3504_p8 = scmp.ne.s32.totalorder %s4010_s16, %s3503_s6  ;;  %p3510_p6 = scmp.lt.u32.totalorder %s3508_s7, %s3503_s6 }
  0xde   : > { %p3512_p0 = scmp.lt.u32.totalorder %s3503_s6, %s4010_s16 }
  0xdf   : > { %p3506_p3 = pnand %p3505_p1, %p3504_p8  ;;  %p3511_p13 = por %p3510_p6, %p3509_p12 }
  0xe1   : > { %p3507_p11 = pneg %p3506_p3  ;;  %p3513_p7 = por %p3512_p0, %p3511_p13 }
  0xe3   : > { %p3514_p5 = pnand %p3513_p7, %p3507_p11 }
  0xe5   : > { %3517 = shalt.err (!%p3514_p5)
}
  0xe6   : > { %s3518_s19 = scalar_lea.vmem %s4019_s11, 128  ;;  %s3677_s13 = smov [#allocation2]  }
  0xe7   : > { %p3519_p8 = scmp.ne.s32.totalorder %s4019_s11, %s3518_s19  ;;  %s3523_s15 = sshll.u32 %s3677_s13, 4  ;;  %s3524_s15 = int_to_ptr.vmem [resolvable:$false] %s3523_s15 }
  0xe8   : > { %s3525_s12 = scalar_lea.vmem %s3524_s15, 256  ;;  %p3526_p4 = scmp.lt.s32.totalorder %s4019_s11, %s3524_s15 }
  0xe9   : > { %p3521_p3 = pnand %p3519_p8, %p3505_p1  ;;  %p3527_p12 = scmp.lt.s32.totalorder %s3525_s12, %s3518_s19 }
  0xeb   : > { %p3522_p9 = pneg %p3521_p3  ;;  %p3528_p6 = por %p3527_p12, %p3526_p4 }
  0xed   : > { %p3529_p13 = pnand %p3528_p6, %p3522_p9 }
  0xef   : > { %3532 = shalt.err (!%p3529_p13)
}
  0xf0   : > { %3106 = dma.hbm_to_vmem [thread:$0]  (!%p4015_p10), %s4010_s16, 128, %s4019_s11, %s547_s5  }
  0xf1   : > { %s565_s6 = sand.u32 1, %s3665_s26   ;;  %s569_s7 = scalar_lea.vmem [#allocation5], %s4005_s30 }
  0xf2   : > { %s576_s14 = sshll.u32 %s569_s7, 4  ;;  %s566_s18 = scalar_lea.sflag [#allocation6], %s565_s6  ;;  %s577_s14 = int_to_ptr.vmem [resolvable:$true] %s576_s14 }
  0xf3   : > { %s3533_s3 = scalar_lea.hbm %s4024_s24, 128  ;;  %s3538_s13 = scalar_lea.hbm %s4350_s1, 256 }
  0xf4   : > { %p3534_p4 = scmp.ne.s32.totalorder %s4024_s24, %s3533_s3  ;;  %p3539_p0 = scmp.lt.u32.totalorder %s4024_s24, %s4350_s1 }
  0xf5   : > { %p3540_p7 = scmp.lt.u32.totalorder %s3538_s13, %s3533_s3  ;;  %p3542_p8 = scmp.lt.u32.totalorder %s3533_s3, %s4024_s24 }
  0xf6   : > { %p3536_p9 = pnand %p3534_p4, %p3505_p1 }
  0xf7   : > { %p3541_p5 = por %p3540_p7, %p3539_p0 }
  0xf8   : > { %p3537_p11 = pneg %p3536_p9 }
  0xf9   : > { %p3543_p3 = por %p3542_p8, %p3541_p5 }
  0xfb   : > { %p3544_p12 = pnand %p3543_p3, %p3537_p11 }
  0xfd   : > { %3547 = shalt.err (!%p3544_p12)
}
  0xfe   : > { %s3548_s5 = scalar_lea.vmem %s577_s14, 128  ;;  %s3678_s30 = smov [#allocation5]  }
  0xff   : > { %p3549_p6 = scmp.ne.s32.totalorder %s577_s14, %s3548_s5  ;;  %s3553_s16 = sshll.u32 %s3678_s30, 4  ;;  %s3554_s16 = int_to_ptr.vmem [resolvable:$false] %s3553_s16 }
 0x100   : > { %s3555_s11 = scalar_lea.vmem %s3554_s16, 256  ;;  %p3556_p9 = scmp.lt.s32.totalorder %s577_s14, %s3554_s16 }
 0x101   : > { %p3551_p13 = pnand %p3549_p6, %p3505_p1  ;;  %p3557_p2 = scmp.lt.s32.totalorder %s3555_s11, %s3548_s5 }
 0x103   : > { %p3552_p4 = pneg %p3551_p13  ;;  %p3558_p0 = por %p3557_p2, %p3556_p9 }
 0x105   : > { %p3559_p7 = pnand %p3558_p0, %p3552_p4 }
 0x107   : > { %3562 = shalt.err (!%p3559_p7)
}
 0x108   : > { %3109 = dma.hbm_to_vmem [thread:$0]  (!%p4015_p10), %s4024_s24, 128, %s577_s14, %s566_s18  }
 0x109   : > { %p4406_p11 = scmp.ne.s32.totalorder %s4389_s28, 0 }
 0x10a   : > { %s4075_s6 = sand.u32 (!%p4406_p11), 1, %s3649_s22   ;;  %p4407_p2 = scmp.ne.s32.totalorder (!%p4406_p11), %s4401_s8, 0 }
 0x10b   : > { %585 = sbr.rel (%p4406_p11) target bundleno = 2874 (0xb3a), region = 84  ;;  %s4078_s7 = sshll.u32 (!%p4406_p11), %s4075_s6, 3 }
 0x10c   : > { %s588_s3 = scalar_lea.sflag (!%p4406_p11), [#allocation3], %s4075_s6  ;;  %s591_s20 = scalar_lea.vmem (!%p4406_p11), [#allocation2], %s4078_s7 }
 0x112   : > { %3616 = dma.done.wait (%p4407_p2), %s588_s3, 128  }
 0x113   : > { %3618 = vsyncadd (%p4407_p2), %s588_s3, 4294967168  ;;  %s596_s28 = sand.u32 1, %s3804_s27   ;;  %s600_s24 = scalar_lea.vmem [#allocation5], %s4078_s7 }
 0x114   : > { %s597_s4 = scalar_lea.sflag [#allocation6], %s596_s28 }
 0x115   : > { %3620 = dma.done.wait (%p4407_p2), %s597_s4, 128  }
 0x116   : > { %3622 = vsyncadd (%p4407_p2), %s597_s4, 4294967168  ;;  %p4408_p10 = scmp.eq.s32.totalorder %s3804_s27, 0 }
 0x118   : > { %3624 = dma.done.wait (%p4408_p10), [#allocation6], 1024   ;;  %p4409_p1 = pmov %p4408_p10 }
 0x11a   : > { %3626 = vsyncadd (%p4409_p1), [#allocation6], 4294966272  ;;  %p4410_p5 = pmov %p4409_p1 }
 0x11b   : > { %p4411_p8 = pmov %p4409_p1 }
 0x11c   : > { %3628 = dma.done.wait (%p4410_p5), [#allocation9], 2048  }
 0x11d   : > { %3630 = vsyncadd (%p4411_p8), [#allocation9], 4294965248  ;;  %p4412_p3 = pmov %p4409_p1 }
 0x11e   : > { %p4413_p12 = pmov %p4409_p1 }
 0x11f   : > { %3632 = dma.done.wait (%p4412_p3), [#allocation12], 5120  }
 0x120   : > { %3634 = vsyncadd (%p4413_p12), [#allocation12], 4294962176  ;;  %p4414_p6 = pmov %p4409_p1 }
 0x121   : > { %p4415_p13 = pmov %p4409_p1 }
 0x122   : > { %3636 = dma.done.wait (%p4414_p6), [#allocation15], 4096  }
 0x123   : > { %3638 = vsyncadd (%p4415_p13), [#allocation15], 4294963200  ;;  %v680_v0 = vld [vmem:[%s600_s24] sm:$0xff]  ;;  %v679_v1 = vld [vmem:[%s591_s20] sm:$0xff]  ;;  %v3679_v11 = vmov 0.0   ;;  %vm3680_vm0 = vmmov 0  }
 0x124   : > { %717 = vadd.xlane.f32.xlu0 %v680_v0  ;;  %v3194_v10 = vld [vmem:[#allocation8] sm:$0xff]   ;;  %2934 = vmatprep.subr.bf16.mxu1 %v3679_v11  ;;  %v3196_v13 = vld [vmem:[#allocation8 + $0x8] sm:$0xff]   ;;  %v3198_v15 = vld [vmem:[#allocation8 + $0x10] sm:$0xff]   ;;  %s4416_s19 = sld [smem:[#allocation26_spill]]  ;;  %s3681_s13 = smov 127   ;;  %vm1385_vm5 = vcmask 1043456  }
 0x125   : > { %2914 = vmatprep.subr.bf16.mxu0 %v3679_v11  ;;  %2935 = vmatpush3.bf16.msra.mxu1 %v3194_v10  ;;  %v3195_v12 = vld [vmem:[#allocation7] sm:$0xff]   ;;  %v3197_v14 = vld [vmem:[#allocation7 + $0x8] sm:$0xff]   ;;  %v3199_v16 = vld [vmem:[#allocation7 + $0x10] sm:$0xff]   ;;  %s3682_s15 = smov 1   ;;  %s4417_s30 = sld [smem:[#allocation31_spill]]  ;;  %vm1139_vm7 = vcmask 261120  }
 0x126   : > { %2936 = vmatprep.subr.bf16.mxu1 %v3679_v11  ;;  %2915 = vmatpush3.bf16.msra.mxu0 %v3195_v12  ;;  %v3200_v17 = vld [vmem:[#allocation8 + $0x18] sm:$0xff]   ;;  %v3202_v19 = vld [vmem:[#allocation8 + $0x20] sm:$0xff]   ;;  %v3204_v21 = vld [vmem:[#allocation8 + $0x28] sm:$0xff]   ;;  %s4418_s3 = sld [smem:[#allocation32_spill]]  ;;  %s3683_s28 = smov 96   ;;  %vm1333_vm9 = vcmask 64512  }
 0x127   : > { %2916 = vmatprep.subr.bf16.mxu0 %v3679_v11  ;;  %v3201_v18 = vld [vmem:[#allocation7 + $0x18] sm:$0xff]   ;;  %2950 = vmatprep.mubr.msk.bf16.mxu1 %vm3680_vm0, %v3679_v11  ;;  %v3203_v20 = vld [vmem:[#allocation7 + $0x20] sm:$0xff]   ;;  %v3205_v22 = vld [vmem:[#allocation7 + $0x28] sm:$0xff]   ;;  %s3684_s4 = smov 64   ;;  %s3685_s24 = smov 32  }
 0x128   : > { %684 = vadd.xlane.f32.xlu0 %v679_v1  ;;  %2930 = vmatprep.mubr.msk.bf16.mxu0 %vm3680_vm0, %v3679_v11  ;;  %v3206_v23 = vld [vmem:[#allocation8 + $0x30] sm:$0xff]   ;;  %v3208_v25 = vld [vmem:[#allocation8 + $0x38] sm:$0xff]   ;;  %v2698_v44 = vld [vmem:[%s4351_s2] ss:$0 sm:$0xff]  ;;  %s4419_s8 = sld [smem:[#allocation33_spill]]  ;;  %s4421_s12 = sld [smem:[#allocation36_spill]] }
 0x129   : > { %2937 = vmatpush3.bf16.msra.mxu1 %v3196_v13  ;;  %v3207_v24 = vld [vmem:[#allocation7 + $0x30] sm:$0xff]   ;;  %v3209_v26 = vld [vmem:[#allocation7 + $0x38] sm:$0xff]   ;;  %v3210_v54 = vld [vmem:[#allocation10] sm:$0xff]   ;;  %s4422_s5 = sld [smem:[#allocation24_spill]]  ;;  %s4423_s11 = sld [smem:[#allocation38_spill]] }
 0x12a   : > { %2938 = vmatprep.subr.bf16.mxu1 %v3679_v11  ;;  %2917 = vmatpush3.bf16.msra.mxu0 %v3197_v14  ;;  %v2699_v46 = vld [vmem:[%s4416_s19] ss:$0 sm:$0xff]  ;;  %v3211_v56 = vld [vmem:[#allocation10 + $0x8] sm:$0xff]   ;;  %v3212_v57 = vld [vmem:[#allocation10 + $0x10] sm:$0xff]   ;;  %v1062_v14 = vlaneseq  ;;  %s4420_s19 = sld [smem:[#allocation34_spill]]  ;;  %s4424_s27 = sld [smem:[#allocation39_spill]] }
 0x12b   : > { %2918 = vmatprep.subr.bf16.mxu0 %v3679_v11  ;;  %v3213_v58 = vld [vmem:[#allocation10 + $0x18] sm:$0xff]   ;;  %v3214_v59 = vld [vmem:[#allocation10 + $0x20] sm:$0xff]   ;;  %v3215_v60 = vld [vmem:[#allocation10 + $0x28] sm:$0xff]   ;;  %s2496_s14 = scalar_lea.sflag [#allocation4], %s4075_s6  ;;  %p4425_p9 = scmp.ne.s32.totalorder %s4402_s10, 0 }
 0x12c   : > { %v3216_v61 = vld [vmem:[#allocation10 + $0x30] sm:$0xff]   ;;  %v3217_v62 = vld [vmem:[#allocation10 + $0x38] sm:$0xff]  }
 0x12d   : > { %2939 = vmatpush3.bf16.msra.mxu1 %v3198_v15  ;;  %v4169_v15 = vand.u32 127, %v1062_v14 }
 0x12e   : > { %2940 = vmatprep.subr.bf16.mxu1 %v3679_v11  ;;  %2919 = vmatpush3.bf16.msra.mxu0 %v3199_v16 }
 0x12f   : > { %2920 = vmatprep.subr.bf16.mxu0 %v3679_v11  ;;  %v1068_v16 = vand.u32 1, %v4169_v15 }
 0x131   : > { %2941 = vmatpush3.bf16.msra.mxu1 %v3200_v17  ;;  %vm1076_vm6 = vcmp.eq.s32.totalorder %v1068_v16, 0 }
 0x132   : > { %2942 = vmatprep.subr.bf16.mxu1 %v3679_v11  ;;  %2921 = vmatpush3.bf16.msra.mxu0 %v3201_v18 }
 0x133   : > { %2922 = vmatprep.subr.bf16.mxu0 %v3679_v11 }
 0x135   : > { %2943 = vmatpush3.bf16.msra.mxu1 %v3202_v19  ;;  %v1083_v19 = vld [vmem:[%s4417_s30] sm:$0xff] }
 0x136   : > { %2944 = vmatprep.subr.bf16.mxu1 %v3679_v11  ;;  %2923 = vmatpush3.bf16.msra.mxu0 %v3203_v20 }
 0x137   : > { %2924 = vmatprep.subr.bf16.mxu0 %v3679_v11 }
 0x139   : > { %2945 = vmatpush3.bf16.msra.mxu1 %v3204_v21  ;;  %v1054_v21 = vld [vmem:[%s4418_s3] sm:$0xff]  ;;  %s2812_s3 = sshll.u32 %s4422_s5, 7 }
 0x13a   : > { %2946 = vmatprep.subr.bf16.mxu1 %v3679_v11  ;;  %2925 = vmatpush3.bf16.msra.mxu0 %v3205_v22 }
 0x13b   : > { %2926 = vmatprep.subr.bf16.mxu0 %v3679_v11 }
 0x13d   : > { %2947 = vmatpush3.bf16.msra.mxu1 %v3206_v23 }
 0x13e   : > { %2948 = vmatprep.subr.bf16.mxu1 %v3679_v11  ;;  %2927 = vmatpush3.bf16.msra.mxu0 %v3207_v24 }
 0x13f   : > { %2928 = vmatprep.subr.bf16.mxu0 %v3679_v11 }
 0x141   : > { %2949 = vmatpush3.bf16.msra.mxu1 %v3208_v25 }
 0x142   : > { %2974 = vmatprep.subr.bf16.mxu1 %v3679_v11  ;;  %2929 = vmatpush3.bf16.msra.mxu0 %v3209_v26 }
 0x143   : > { %2954 = vmatprep.subr.bf16.mxu0 %v3679_v11 }
 0x1b1   : > { %v718_v2 = vpop.xlane.xlu0 %717 }
 0x1b2   : > { %v719_v3 = vmul.f32 0.0078125, %v718_v2 }
 0x1b4   : > { %v4110_v4 = vsub.f32 %v680_v0, %v719_v3 }
 0x1b5   : > { %v685_v5 = vpop.xlane.xlu0 %684 }
 0x1b6   : > { %v687_v6 = vmul.f32 0.0078125, %v685_v5  ;;  %v721_v7 = vmul.f32 %v4110_v4, %v4110_v4 }
 0x1b8   : > { %v4114_v8 = vsub.f32 %v679_v1, %v687_v6  ;;  %722 = vadd.xlane.f32.xlu1 %v721_v7 }
 0x1ba   : > { %v689_v9 = vmul.f32 %v4114_v8, %v4114_v8 }
 0x1bc   : > { %690 = vadd.xlane.f32.xlu1 %v689_v9 }
 0x245   : > { %v723_v27 = vpop.xlane.xlu1 %722 }
 0x246   : > { %v724_v28 = vmul.f32 0.007874016, %v723_v27 }
 0x248   : > { %3306 = vrsqrt.f32 %v724_v28  ;;  %vm727_vm1 = vcmp.eq.f32.partialorder %v724_v28, inf  ;;  %v730_v33 = vand.u32 2147483648, %v724_v28  ;;  %vm729_vm2 = vcmp.eq.f32.partialorder %v724_v28, 0.0 }
 0x249   : > { %v691_v29 = vpop.xlane.xlu1 %690 }
 0x24a   : > { %v692_v30 = vmul.f32 0.007874016, %v691_v29 }
 0x24c   : > { %3308 = vrsqrt.f32 %v692_v30  ;;  %vm695_vm3 = vcmp.eq.f32.partialorder %v692_v30, inf  ;;  %v698_v39 = vand.u32 2147483648, %v692_v30  ;;  %vm697_vm4 = vcmp.eq.f32.partialorder %v692_v30, 0.0 }
 0x252   : > { %v3307_v31 = vpop.eup %3306 }
 0x253   : > { %v726_v32 = vmul.f32 %v3307_v31, %v724_v28 }
 0x255   : > { %v728_v34 = vsel %vm727_vm1, %v724_v28, %v726_v32 }
 0x256   : > { %v3309_v35 = vpop.eup %3308  ;;  %v731_v36 = vsel %vm729_vm2, %v730_v33, %v728_v34 }
 0x257   : > { %v694_v37 = vmul.f32 %v3309_v35, %v692_v30  ;;  %v732_v38 = vadd.f32 1e-06, %v731_v36 }
 0x259   : > { %v696_v40 = vsel %vm695_vm3, %v692_v30, %v694_v37  ;;  %3310 = vrcp.f32 %v732_v38 }
 0x25a   : > { %v699_v41 = vsel %vm697_vm4, %v698_v39, %v696_v40 }
 0x25b   : > { %v700_v42 = vadd.f32 1e-06, %v699_v41 }
 0x25d   : > { %3312 = vrcp.f32 %v700_v42 }
 0x263   : > { %v3311_v43 = vpop.eup %3310 }
 0x264   : > { %v734_v45 = vmul.f32 %v3311_v43, %v4110_v4 }
 0x266   : > { %v735_v47 = vmul.f32 %v2698_v44, %v734_v45 }
 0x267   : > { %v3313_v48 = vpop.eup %3312 }
 0x268   : > { %v736_v49 = vadd.f32 %v2699_v46, %v735_v47  ;;  %v702_v50 = vmul.f32 %v3313_v48, %v4114_v8 }
 0x26a   : > { %v842_v51 = vpack.c.bf16 %v736_v49, %v736_v49  ;;  %v709_v52 = vmul.f32 %v2698_v44, %v702_v50 }
 0x26c   : > { %2951 = vmatmul.mubr.bf16.vlgmr.msra.gmra.mrb[0].mxu1 %v842_v51  ;;  %v716_v53 = vadd.f32 %v2699_v46, %v709_v52  ;;  %v4205_v52 = vshrl.u32 %v1062_v14, 7 }
 0x26d   : > { %2976 = vmatprep.mubr.msk.bf16.mxu1 %vm3680_vm0, %v3679_v11 }
 0x26e   : > { %v737_v55 = vpack.c.bf16 %v716_v53, %v716_v53  ;;  %vm1328_vm8 = vcmp.gt.s32.totalorder %v4169_v15, %v4205_v52 }
 0x270   : > { %2931 = vmatmul.mubr.bf16.vlgmr.msra.gmra.mrb[0].mxu0 %v737_v55 }
 0x271   : > { %2955 = vmatpush3.bf16.msra.mxu0 %v3210_v54  ;;  %2970 = vmatprep.mubr.msk.bf16.mxu0 %vm3680_vm0, %v3679_v11 }
 0x272   : > { %2956 = vmatprep.subr.bf16.mxu0 %v3679_v11 }
 0x275   : > { %2957 = vmatpush3.bf16.msra.mxu0 %v3211_v56 }
 0x276   : > { %2958 = vmatprep.subr.bf16.mxu0 %v3679_v11 }
 0x279   : > { %2959 = vmatpush3.bf16.msra.mxu0 %v3212_v57 }
 0x27a   : > { %2960 = vmatprep.subr.bf16.mxu0 %v3679_v11 }
 0x27d   : > { %2961 = vmatpush3.bf16.msra.mxu0 %v3213_v58 }
 0x27e   : > { %2962 = vmatprep.subr.bf16.mxu0 %v3679_v11 }
 0x281   : > { %2963 = vmatpush3.bf16.msra.mxu0 %v3214_v59 }
 0x282   : > { %2964 = vmatprep.subr.bf16.mxu0 %v3679_v11 }
 0x285   : > { %2965 = vmatpush3.bf16.msra.mxu0 %v3215_v60 }
 0x286   : > { %2966 = vmatprep.subr.bf16.mxu0 %v3679_v11 }
 0x289   : > { %2967 = vmatpush3.bf16.msra.mxu0 %v3216_v61 }
 0x28a   : > { %2968 = vmatprep.subr.bf16.mxu0 %v3679_v11 }
 0x28d   : > { %2969 = vmatpush3.bf16.msra.mxu0 %v3217_v62 }
 0x28e   : > { %2998 = vmatprep.subr.bf16.mxu0 %v3679_v11 }
 0x290   : > { %2971 = vmatmul.mubr.bf16.vlgmr.msra.gmra.mrb[4].mxu0 %v842_v51 }
 0x291   : > { %3000 = vmatprep.mubr.msk.bf16.mxu0 %vm3680_vm0, %v3679_v11 }
 0x33f   : > { %v941_v63 = vpop.f32.mrb[0].mxu1 }
 0x340   : > { %v2952_v0 = vpop.f32.mrb[1].mxu1  ;;  %1086 = vrot.lane.b32.xlu0 %v941_v63, %s3681_s13  ;;  %1089 = vrot.lane.b32.xlu1 %v941_v63, %s3682_s15  ;;  %v1094_v23 = vmul.f32 %v1083_v19, %v941_v63 }
 0x341   : > { %v944_v1 = vpop.f32.mrb[2].mxu1 }
 0x342   : > { %v2953_v2 = vpop.f32.mrb[3].mxu1 }
 0x343   : > { %v836_v3 = vpop.f32.mrb[0].mxu0 }
 0x344   : > { %1056 = vrot.lane.b32.xlu1 %v836_v3, %s3681_s13  ;;  %v2932_v4 = vpop.f32.mrb[1].mxu0  ;;  %v1079_v31 = vmul.f32 %v1083_v19, %v836_v3 }
 0x345   : > { %v839_v5 = vpop.f32.mrb[2].mxu0 }
 0x346   : > { %v2933_v6 = vpop.f32.mrb[3].mxu0 }
 0x348   : > { %1059 = vrot.lane.b32.xlu1 %v836_v3, %s3682_s15 }
 0x363   : > { %v4162_v7 = vpop.f32.mrb[4].mxu0 }
 0x364   : > { %v2972_v8 = vpop.f32.mrb[5].mxu0  ;;  %v1135_v9 = vpack.c.bf16 %v4162_v7, %v4162_v7 }
 0x365   : > { %v1048_v10 = vpop.f32.mrb[6].mxu0 }
 0x366   : > { %v2973_v12 = vpop.f32.mrb[7].mxu0  ;;  %v1387_v13 = vsel %vm1385_vm5, %v1135_v9, 0 }
 0x367   : > { %2999 = vmatpush3.bf16.msra.mxu0 %v1387_v13 }
 0x368   : > { %3010 = vmatprep.subr.bf16.mxu0 %v3679_v11 }
 0x3b2   : > { %v1090_v17 = vpop.permute.xlu1 %1089  ;;  %v1087_v18 = vpop.permute.xlu0 %1086 }
 0x3b3   : > { %v1092_v20 = vsub.f32 0.0, %v1087_v18 }
 0x3b5   : > { %v1093_v22 = vsel %vm1076_vm6, %v1092_v20, %v1090_v17 }
 0x3b6   : > { %v1057_v24 = vpop.permute.xlu1 %1056  ;;  %v1095_v25 = vmul.f32 %v1093_v22, %v1054_v21 }
 0x3b7   : > { %v1077_v27 = vsub.f32 0.0, %v1057_v24 }
 0x3b8   : > { %v1096_v26 = vadd.f32 %v1095_v25, %v1094_v23 }
 0x3ba   : > { %v1060_v28 = vpop.permute.xlu1 %1059  ;;  %1112 = vrot.lane.b32.xlu0 %v1096_v26, %s3683_s28  ;;  %v1121_v29 = vpack.c.bf16 %v1096_v26, %v1096_v26 }
 0x3bb   : > { %v1078_v30 = vsel %vm1076_vm6, %v1077_v27, %v1060_v28 }
 0x3bc   : > { %v1080_v32 = vmul.f32 %v1078_v30, %v1054_v21  ;;  %v1144_v33 = vsel %vm1139_vm7, %v1121_v29, 0 }
 0x3bd   : > { %2975 = vmatpush3.bf16.xpose.msra.mxu1 %v1144_v33 }
 0x3be   : > { %v1081_v34 = vadd.f32 %v1080_v32, %v1079_v31  ;;  %1115 = vrot.lane.b32.xlu0 %v1096_v26, %s3684_s4  ;;  %2980 = vmatprep.subr.bf16.mxu1 %v3679_v11 }
 0x3c0   : > { %v1082_v35 = vmul.f32 0.088388346, %v1081_v34 }
 0x3c2   : > { %1098 = vrot.lane.b32.xlu1 %v1082_v35, %s3683_s28  ;;  %1118 = vrot.lane.b32.xlu0 %v1096_v26, %s3685_s24  ;;  %v1107_v36 = vpack.c.bf16 %v1082_v35, %v1082_v35 }
 0x3c4   : > { %2977 = vmatmul.mubr.msk.bf16.vlgmr.msra.gmra.mrb[4].mxu1 %vm1139_vm7, %v1107_v36 }
 0x3c5   : > { %2982 = vmatprep.mubr.msk.bf16.mxu1 %vm3680_vm0, %v3679_v11 }
 0x3c6   : > { %1101 = vrot.lane.b32.xlu1 %v1082_v35, %s3684_s4 }
 0x3ca   : > { %1104 = vrot.lane.b32.xlu1 %v1082_v35, %s3685_s24 }
 0x42c   : > { %v1113_v37 = vpop.permute.xlu0 %1112 }
 0x42d   : > { %v1122_v38 = vpack.c.bf16 %v1113_v37, %v1113_v37 }
 0x42f   : > { %v1190_v39 = vsel %vm1139_vm7, %v1122_v38, 0 }
 0x430   : > { %v1116_v40 = vpop.permute.xlu0 %1115  ;;  %2981 = vmatpush3.bf16.xpose.msra.mxu1 %v1190_v39 }
 0x431   : > { %2986 = vmatprep.subr.bf16.mxu1 %v3679_v11  ;;  %v1123_v41 = vpack.c.bf16 %v1116_v40, %v1116_v40 }
 0x433   : > { %v1236_v44 = vsel %vm1139_vm7, %v1123_v41, 0 }
 0x434   : > { %v1099_v42 = vpop.permute.xlu1 %1098  ;;  %v1119_v45 = vpop.permute.xlu0 %1118 }
 0x435   : > { %v1108_v43 = vpack.c.bf16 %v1099_v42, %v1099_v42  ;;  %v1124_v47 = vpack.c.bf16 %v1119_v45, %v1119_v45 }
 0x437   : > { %2983 = vmatmul.mubr.msk.bf16.vlgmr.msra.gmra.mrb[8].mxu1 %vm1139_vm7, %v1108_v43  ;;  %v1282_v49 = vsel %vm1139_vm7, %v1124_v47, 0 }
 0x438   : > { %2987 = vmatpush3.bf16.xpose.msra.mxu1 %v1236_v44  ;;  %2988 = vmatprep.mubr.msk.bf16.mxu1 %vm3680_vm0, %v3679_v11  ;;  %v1102_v46 = vpop.permute.xlu1 %1101 }
 0x439   : > { %2992 = vmatprep.subr.bf16.mxu1 %v3679_v11  ;;  %v1109_v48 = vpack.c.bf16 %v1102_v46, %v1102_v46 }
 0x43c   : > { %v1105_v50 = vpop.permute.xlu1 %1104 }
 0x43d   : > { %v1110_v51 = vpack.c.bf16 %v1105_v50, %v1105_v50 }
 0x43f   : > { %2989 = vmatmul.mubr.msk.bf16.vlgmr.msra.gmra.mrb[12].mxu1 %vm1139_vm7, %v1109_v48 }
 0x440   : > { %2993 = vmatpush3.bf16.xpose.msra.mxu1 %v1282_v49  ;;  %2994 = vmatprep.mubr.msk.bf16.mxu1 %vm3680_vm0, %v3679_v11 }
 0x441   : > { %3004 = vmatprep.subr.bf16.mxu1 %v3679_v11 }
 0x447   : > { %2995 = vmatmul.mubr.msk.bf16.vlgmr.msra.gmra.mrb[16].mxu1 %vm1139_vm7, %v1110_v51  ;;  %v3218_v51 = vld [vmem:[#allocation11] sm:$0xff]  }
 0x448   : > { %3006 = vmatprep.mubr.msk.bf16.mxu1 %vm3680_vm0, %v3679_v11 }
 0x497   : > { %v1180_v53 = vpop.f32.mrb[4].mxu1 }
 0x498   : > { %v1329_v54 = vsel %vm1328_vm8, -2.3819763e+38, %v1180_v53  ;;  %v2978_v55 = vpop.f32.mrb[5].mxu1 }
 0x499   : > { %v1183_v56 = vpop.f32.mrb[6].mxu1  ;;  %v1334_v57 = vsel %vm1333_vm9, %v1329_v54, -inf }
 0x49a   : > { %1335 = vmax.xlane.f32.xlu0 %v1334_v57  ;;  %v2979_v58 = vpop.f32.mrb[7].mxu1 }
 0x50a   : > { %v1226_v59 = vpop.f32.mrb[8].mxu1 }
 0x50b   : > { %v1330_v60 = vsel %vm1328_vm8, -2.3819763e+38, %v1226_v59  ;;  %v2984_v61 = vpop.f32.mrb[9].mxu1 }
 0x50c   : > { %v1229_v62 = vpop.f32.mrb[10].mxu1  ;;  %v1337_v63 = vsel %vm1333_vm9, %v1330_v60, -inf  ;;  %v3220_v61 = vld [vmem:[#allocation11 + $0x10] sm:$0xff]  }
 0x50d   : > { %1338 = vmax.xlane.f32.xlu1 %v1337_v63  ;;  %v2985_v0 = vpop.f32.mrb[11].mxu1  ;;  %v3221_v63 = vld [vmem:[#allocation11 + $0x18] sm:$0xff]  }
 0x512   : > { %v1272_v1 = vpop.f32.mrb[12].mxu1 }
 0x513   : > { %v1331_v2 = vsel %vm1328_vm8, -2.3819763e+38, %v1272_v1  ;;  %v2990_v3 = vpop.f32.mrb[13].mxu1  ;;  %v3222_v1 = vld [vmem:[#allocation11 + $0x20] sm:$0xff]  }
 0x514   : > { %v1275_v4 = vpop.f32.mrb[14].mxu1  ;;  %v1340_v5 = vsel %vm1333_vm9, %v1331_v2, -inf }
 0x515   : > { %1341 = vmax.xlane.f32.xlu0 %v1340_v5  ;;  %v2991_v6 = vpop.f32.mrb[15].mxu1 }
 0x516   : > { %v3223_v6 = vld [vmem:[#allocation11 + $0x28] sm:$0xff]  }
 0x51a   : > { %v1318_v8 = vpop.f32.mrb[16].mxu1 }
 0x51b   : > { %v1332_v9 = vsel %vm1328_vm8, -2.3819763e+38, %v1318_v8  ;;  %v2996_v10 = vpop.f32.mrb[17].mxu1 }
 0x51c   : > { %v1321_v12 = vpop.f32.mrb[18].mxu1  ;;  %v1343_v13 = vsel %vm1333_vm9, %v1332_v9, -inf }
 0x51d   : > { %1344 = vmax.xlane.f32.xlu0 %v1343_v13  ;;  %v2997_v14 = vpop.f32.mrb[19].mxu1 }
 0x527   : > { %v1336_v16 = vpop.xlane.xlu0 %1335 }
 0x528   : > { %v1346_v17 = vsub.f32 %v1329_v54, %v1336_v16  ;;  %v3219_v54 = vld [vmem:[#allocation11 + $0x8] sm:$0xff]   ;;  %v3225_v16 = vld [vmem:[#allocation11 + $0x38] sm:$0xff]  }
 0x52a   : > { %v1350_v18 = vmul.f32 1.442695, %v1346_v17 }
 0x52c   : > { %3314 = vpow2.f32 %v1350_v18 }
 0x536   : > { %v3315_v19 = vpop.eup %3314 }
 0x537   : > { %v1358_v20 = vsel %vm1333_vm9, %v3315_v19, 0.0 }
 0x538   : > { %1359 = vadd.xlane.f32.xlu0 %v1358_v20 }
 0x59a   : > { %v1339_v21 = vpop.xlane.xlu1 %1338 }
 0x59b   : > { %v1347_v22 = vsub.f32 %v1330_v60, %v1339_v21 }
 0x59d   : > { %v1352_v23 = vmul.f32 1.442695, %v1347_v22 }
 0x59f   : > { %3316 = vpow2.f32 %v1352_v23 }
 0x5a2   : > { %v1342_v15 = vpop.xlane.xlu0 %1341 }
 0x5a3   : > { %v1348_v24 = vsub.f32 %v1331_v2, %v1342_v15 }
 0x5a5   : > { %v1354_v25 = vmul.f32 1.442695, %v1348_v24 }
 0x5a7   : > { %3318 = vpow2.f32 %v1354_v25 }
 0x5a9   : > { %v3317_v26 = vpop.eup %3316 }
 0x5aa   : > { %v1361_v27 = vsel %vm1333_vm9, %v3317_v26, 0.0  ;;  %v1345_v30 = vpop.xlane.xlu0 %1344 }
 0x5ab   : > { %1362 = vadd.xlane.f32.xlu1 %v1361_v27  ;;  %v1349_v32 = vsub.f32 %v1332_v9, %v1345_v30  ;;  %v3224_v9 = vld [vmem:[#allocation11 + $0x30] sm:$0xff]  }
 0x5ad   : > { %v1356_v33 = vmul.f32 1.442695, %v1349_v32 }
 0x5b1   : > { %v3319_v28 = vpop.eup %3318 }
 0x5b2   : > { %v1364_v29 = vsel %vm1333_vm9, %v3319_v28, 0.0 }
 0x5b3   : > { %1365 = vadd.xlane.f32.xlu0 %v1364_v29 }
 0x5bc   : > { %1129 = vrot.lane.b32.xlu1 %v4162_v7, %s3684_s4 }
 0x5c5   : > { %v1360_v31 = vpop.xlane.xlu0 %1359 }
 0x5c6   : > { %3320 = vrcp.f32 %v1360_v31 }
 0x5c7   : > { %3322 = vpow2.f32 %v1356_v33 }
 0x5c9   : > { %1126 = vrot.lane.b32.xlu0 %v4162_v7, %s3683_s28  ;;  %s677_s28 = scalar_lea.vmem [#allocation16], %s4078_s7  ;;  %s3687_s7 = smov [#allocation16]  }
 0x5ca   : > { %s2510_s4 = sshll.u32 %s677_s28, 4  ;;  %s4302_s4 = int_to_ptr.vmem [resolvable:$true] %s2510_s4 }
 0x5cb   : > { %s3563_s18 = scalar_lea.vmem %s4302_s4, 128 }
 0x5cc   : > { %p3564_p4 = scmp.ne.s32.totalorder %s4302_s4, %s3563_s18 }
 0x5ce   : > { %p3565_p0 = pnand %p3564_p4, %p4425_p9 }
 0x5d0   : > { %v3321_v34 = vpop.eup %3320  ;;  %p3566_p7 = pneg %p3565_p0 }
 0x5d1   : > { %v1374_v35 = vmul.f32 %v3321_v34, %v3315_v19  ;;  %v3323_v37 = vpop.eup %3322 }
 0x5d2   : > { %v1367_v38 = vsel %vm1333_vm9, %v3323_v37, 0.0 }
 0x5d3   : > { %v1378_v36 = vpack.c.bf16 %v1374_v35, %v1374_v35 }
 0x5d5   : > { %3001 = vmatmul.mubr.msk.bf16.vlgmr.msra.gmra.mrb[8].mxu0 %vm1333_vm9, %v1378_v36 }
 0x5d6   : > { %3012 = vmatprep.mubr.msk.bf16.mxu0 %vm3680_vm0, %v3679_v11 }
 0x5e0   : > { %1368 = vadd.xlane.f32.xlu1 %v1367_v38 }
 0x5f1   : > { %1132 = vrot.lane.b32.xlu1 %v4162_v7, %s3685_s24 }
 0x638   : > { %v1363_v39 = vpop.xlane.xlu1 %1362 }
 0x639   : > { %3324 = vrcp.f32 %v1363_v39 }
 0x63c   : > { %v1130_v40 = vpop.permute.xlu1 %1129 }
 0x63d   : > { %v1137_v41 = vpack.c.bf16 %v1130_v40, %v1130_v40 }
 0x63f   : > { %v1479_v42 = vsel %vm1385_vm5, %v1137_v41, 0 }
 0x640   : > { %3011 = vmatpush3.bf16.msra.mxu0 %v1479_v42  ;;  %v1366_v43 = vpop.xlane.xlu0 %1365 }
 0x641   : > { %3326 = vrcp.f32 %v1366_v43  ;;  %3022 = vmatprep.subr.bf16.mxu0 %v3679_v11  ;;  %v3334_v43 = vld [vmem:[%s591_s20] sm:$0xff] }
 0x643   : > { %v3325_v44 = vpop.eup %3324 }
 0x644   : > { %v1127_v45 = vpop.permute.xlu0 %1126  ;;  %v1375_v46 = vmul.f32 %v3325_v44, %v3317_v26 }
 0x645   : > { %v1136_v47 = vpack.c.bf16 %v1127_v45, %v1127_v45 }
 0x646   : > { %v1379_v49 = vpack.c.bf16 %v1375_v46, %v1375_v46 }
 0x647   : > { %v1433_v48 = vsel %vm1385_vm5, %v1136_v47, 0 }
 0x648   : > { %3005 = vmatpush3.bf16.msra.mxu1 %v1433_v48 }
 0x649   : > { %3016 = vmatprep.subr.bf16.mxu1 %v3679_v11 }
 0x64b   : > { %v3327_v7 = vpop.eup %3326  ;;  %3007 = vmatmul.mubr.msk.bf16.vlgmr.msra.gmra.mrb[20].mxu1 %vm1333_vm9, %v1379_v49 }
 0x64c   : > { %v1376_v50 = vmul.f32 %v3327_v7, %v3319_v28  ;;  %3018 = vmatprep.mubr.msk.bf16.mxu1 %vm3680_vm0, %v3679_v11  ;;  %v3228_v7 = vld [vmem:[#allocation13 + $0x4] ss:$16 sps:$4 sm:$0xff]  }
 0x64e   : > { %v1380_v53 = vpack.c.bf16 %v1376_v50, %v1376_v50  ;;  %v3231_v50 = vld [vmem:[#allocation13 + $0xc] ss:$16 sps:$4 sm:$0xff]  }
 0x650   : > { %3013 = vmatmul.mubr.msk.bf16.vlgmr.msra.gmra.mrb[12].mxu0 %vm1333_vm9, %v1380_v53  ;;  %v3229_v53 = vld [vmem:[#allocation13 + $0x8] ss:$16 sps:$4 sm:$0xff]  }
 0x651   : > { %3023 = vmatpush3.bf16.msra.mxu0 %v3218_v51  ;;  %3026 = vmatprep.mubr.msk.bf16.mxu0 %vm3680_vm0, %v3679_v11  ;;  %v3226_v51 = vld [vmem:[#allocation13] ss:$16 sps:$4 sm:$0xff]  }
 0x652   : > { %3024 = vmatprep.subr.bf16.mxu0 %v3679_v11 }
 0x655   : > { %3025 = vmatpush3.bf16.msra.mxu0 %v3219_v54  ;;  %v3234_v54 = vld [vmem:[#allocation13 + $0x24] ss:$16 sps:$4 sm:$0xff]  }
 0x656   : > { %3038 = vmatprep.subr.bf16.mxu0 %v3679_v11 }
 0x66d   : > { %v1369_v55 = vpop.xlane.xlu1 %1368 }
 0x66e   : > { %3328 = vrcp.f32 %v1369_v55  ;;  %v3237_v55 = vld [vmem:[#allocation13 + $0x2c] ss:$16 sps:$4 sm:$0xff]  }
 0x671   : > { %v1133_v56 = vpop.permute.xlu1 %1132 }
 0x672   : > { %v1138_v57 = vpack.c.bf16 %v1133_v56, %v1133_v56  ;;  %v3232_v56 = vld [vmem:[#allocation13 + $0x20] ss:$16 sps:$4 sm:$0xff]  }
 0x674   : > { %v1525_v58 = vsel %vm1385_vm5, %v1138_v57, 0  ;;  %v3235_v57 = vld [vmem:[#allocation13 + $0x28] ss:$16 sps:$4 sm:$0xff]  }
 0x675   : > { %3017 = vmatpush3.bf16.msra.mxu1 %v1525_v58  ;;  %v3240_v58 = vld [vmem:[#allocation13 + $0x44] ss:$16 sps:$4 sm:$0xff]  }
 0x676   : > { %3030 = vmatprep.subr.bf16.mxu1 %v3679_v11 }
 0x678   : > { %v3329_v59 = vpop.eup %3328 }
 0x679   : > { %v1377_v60 = vmul.f32 %v3329_v59, %v3323_v37  ;;  %v3243_v59 = vld [vmem:[#allocation13 + $0x4c] ss:$16 sps:$4 sm:$0xff]  }
 0x67b   : > { %v1381_v62 = vpack.c.bf16 %v1377_v60, %v1377_v60  ;;  %v3238_v60 = vld [vmem:[#allocation13 + $0x40] ss:$16 sps:$4 sm:$0xff]  }
 0x67d   : > { %3019 = vmatmul.mubr.msk.bf16.vlgmr.msra.gmra.mrb[24].mxu1 %vm1333_vm9, %v1381_v62  ;;  %v3246_v62 = vld [vmem:[#allocation13 + $0x64] ss:$16 sps:$4 sm:$0xff]  }
 0x67e   : > { %3031 = vmatpush3.bf16.msra.mxu1 %v3220_v61  ;;  %3034 = vmatprep.mubr.msk.bf16.mxu1 %vm3680_vm0, %v3679_v11  ;;  %v3241_v61 = vld [vmem:[#allocation13 + $0x48] ss:$16 sps:$4 sm:$0xff]  }
 0x67f   : > { %3032 = vmatprep.subr.bf16.mxu1 %v3679_v11 }
 0x682   : > { %3033 = vmatpush3.bf16.msra.mxu1 %v3221_v63  ;;  %v3249_v63 = vld [vmem:[#allocation13 + $0x6c] ss:$16 sps:$4 sm:$0xff]  }
 0x683   : > { %3046 = vmatprep.subr.bf16.mxu1 %v3679_v11 }
 0x6a8   : > { %v1423_v0 = vpop.f32.mrb[8].mxu0 }
 0x6a9   : > { %v1567_v2 = vpack.c.bf16 %v1423_v0, %v1423_v0  ;;  %v3002_v3 = vpop.f32.mrb[9].mxu0  ;;  %v3244_v0 = vld [vmem:[#allocation13 + $0x60] ss:$16 sps:$4 sm:$0xff]  }
 0x6aa   : > { %v1426_v4 = vpop.f32.mrb[10].mxu0  ;;  %v3250_v3 = vld [vmem:[#allocation13 + $0x80] ss:$16 sps:$4 sm:$0xff]  }
 0x6ab   : > { %v3003_v5 = vpop.f32.mrb[11].mxu0  ;;  %3027 = vmatmul.mubr.msk.bf16.vlgmr.msra.gmra.mrb[16].mxu0 %vm1139_vm7, %v1567_v2  ;;  %v3252_v2 = vld [vmem:[#allocation13 + $0x84] ss:$16 sps:$4 sm:$0xff]   ;;  %v3253_v4 = vld [vmem:[#allocation13 + $0x88] ss:$16 sps:$4 sm:$0xff]  }
 0x6ac   : > { %3039 = vmatpush3.bf16.msra.mxu0 %v3222_v1  ;;  %3042 = vmatprep.mubr.msk.bf16.mxu0 %vm3680_vm0, %v3679_v11  ;;  %v3247_v1 = vld [vmem:[#allocation13 + $0x68] ss:$16 sps:$4 sm:$0xff]   ;;  %v3255_v5 = vld [vmem:[#allocation13 + $0x8c] ss:$16 sps:$4 sm:$0xff]  }
 0x6ad   : > { %3040 = vmatprep.subr.bf16.mxu0 %v3679_v11 }
 0x6b0   : > { %3041 = vmatpush3.bf16.msra.mxu0 %v3223_v6  ;;  %v3258_v6 = vld [vmem:[#allocation13 + $0xa4] ss:$16 sps:$4 sm:$0xff]  }
 0x6b1   : > { %2060 = vmatprep.subr.bf16.mxu0 %v3228_v7  ;;  %v3288_v7 = vld [vmem:[#allocation14 + $0x18] sm:$0xff]  }
 0x71e   : > { %v1469_v8 = vpop.f32.mrb[20].mxu1 }
 0x71f   : > { %v1568_v10 = vpack.c.bf16 %v1469_v8, %v1469_v8  ;;  %v3008_v12 = vpop.f32.mrb[21].mxu1  ;;  %v3261_v8 = vld [vmem:[#allocation13 + $0xac] ss:$16 sps:$4 sm:$0xff]  }
 0x720   : > { %v1472_v13 = vpop.f32.mrb[22].mxu1  ;;  %v3264_v12 = vld [vmem:[#allocation13 + $0xc4] ss:$16 sps:$4 sm:$0xff]  }
 0x721   : > { %v3009_v14 = vpop.f32.mrb[23].mxu1  ;;  %3035 = vmatmul.mubr.msk.bf16.vlgmr.msra.gmra.mrb[28].mxu1 %vm1139_vm7, %v1568_v10  ;;  %v3259_v10 = vld [vmem:[#allocation13 + $0xa8] ss:$16 sps:$4 sm:$0xff]   ;;  %v3267_v13 = vld [vmem:[#allocation13 + $0xcc] ss:$16 sps:$4 sm:$0xff]  }
 0x722   : > { %3047 = vmatpush3.bf16.msra.mxu1 %v3224_v9  ;;  %3050 = vmatprep.mubr.msk.bf16.mxu1 %vm3680_vm0, %v3679_v11  ;;  %v3256_v9 = vld [vmem:[#allocation13 + $0xa0] ss:$16 sps:$4 sm:$0xff]   ;;  %v3686_v14 = vmov 0  }
 0x723   : > { %v1515_v17 = vpop.f32.mrb[12].mxu0  ;;  %3048 = vmatprep.subr.bf16.mxu1 %v3679_v11 }
 0x724   : > { %v1569_v18 = vpack.c.bf16 %v1515_v17, %v1515_v17  ;;  %v3014_v19 = vpop.f32.mrb[13].mxu0  ;;  %v3265_v17 = vld [vmem:[#allocation13 + $0xc8] ss:$16 sps:$4 sm:$0xff]  }
 0x725   : > { %v1518_v20 = vpop.f32.mrb[14].mxu0  ;;  %v3273_v19 = vld [vmem:[#allocation13 + $0xec] ss:$16 sps:$4 sm:$0xff]  }
 0x726   : > { %v3015_v21 = vpop.f32.mrb[15].mxu0  ;;  %3043 = vmatmul.mubr.msk.bf16.vlgmr.msra.gmra.mrb[20].mxu0 %vm1139_vm7, %v1569_v18  ;;  %3049 = vmatpush3.bf16.msra.mxu1 %v3225_v16  ;;  %v3262_v16 = vld [vmem:[#allocation13 + $0xc0] ss:$16 sps:$4 sm:$0xff]   ;;  %v3270_v18 = vld [vmem:[#allocation13 + $0xe4] ss:$16 sps:$4 sm:$0xff]  }
 0x727   : > { %2101 = vmatprep.subr.bf16.mxu1 %v3231_v50  ;;  %2061 = vmatpush1.bf16.msra.mxu0 %v3226_v51  ;;  %v3268_v20 = vld [vmem:[#allocation13 + $0xe0] ss:$16 sps:$4 sm:$0xff]   ;;  %v3271_v21 = vld [vmem:[#allocation13 + $0xe8] ss:$16 sps:$4 sm:$0xff]  }
 0x728   : > { %2062 = vmatprep.subr.bf16.mxu0 %v3234_v54  ;;  %2092 = vmatprep.mubr.bf16.mxu0 %v3686_v14  ;;  %v3289_v50 = vld [vmem:[#allocation14 + $0x98] sm:$0xff]   ;;  %v3290_v51 = vld [vmem:[#allocation14 + $0x60] sm:$0xff]  }
 0x729   : > { %v3292_v54 = vld [vmem:[#allocation14 + $0x20] sm:$0xff]  }
 0x72b   : > { %2063 = vmatpush1.bf16.msra.mxu0 %v3232_v56  ;;  %v3294_v56 = vld [vmem:[#allocation14 + $0x68] sm:$0xff]  }
 0x72c   : > { %2064 = vmatprep.subr.bf16.mxu0 %v3240_v58  ;;  %v3296_v58 = vld [vmem:[#allocation14 + $0x28] sm:$0xff]  }
 0x72f   : > { %2065 = vmatpush1.bf16.msra.mxu0 %v3238_v60  ;;  %v3298_v60 = vld [vmem:[#allocation14 + $0x70] sm:$0xff]  }
 0x730   : > { %2066 = vmatprep.subr.bf16.mxu0 %v3246_v62  ;;  %v3300_v62 = vld [vmem:[#allocation14 + $0x30] sm:$0xff]  }
 0x733   : > { %2067 = vmatpush1.bf16.msra.mxu0 %v3244_v0  ;;  %v3302_v0 = vld [vmem:[#allocation14 + $0x78] sm:$0xff]  }
 0x734   : > { %2068 = vmatprep.subr.bf16.mxu0 %v3252_v2  ;;  %v3304_v2 = vld [vmem:[#allocation14 + $0x38] sm:$0xff]  }
 0x737   : > { %2069 = vmatpush1.bf16.msra.mxu0 %v3250_v3  ;;  %v3305_v3 = vld [vmem:[#allocation14 + $0xb8] sm:$0xff]  }
 0x738   : > { %2070 = vmatprep.subr.bf16.mxu0 %v3258_v6  ;;  %v1878_v6 = vld [vmem:[%s4421_s12] sm:$0xf] }
 0x73b   : > { %2071 = vmatpush1.bf16.msra.mxu0 %v3256_v9  ;;  %v1894_v9 = vsub.s32 3, %v4205_v52 }
 0x73c   : > { %2072 = vmatprep.subr.bf16.mxu0 %v3264_v12 }
 0x73f   : > { %2073 = vmatpush1.bf16.msra.mxu0 %v3262_v16 }
 0x740   : > { %2074 = vmatprep.subr.bf16.mxu0 %v3270_v18 }
 0x743   : > { %2075 = vmatpush1.bf16.msra.mxu0 %v3268_v20 }
 0x750   : > { %v1561_v22 = vpop.f32.mrb[24].mxu1 }
 0x751   : > { %v1570_v23 = vpack.c.bf16 %v1561_v22, %v1561_v22  ;;  %v3020_v15 = vpop.f32.mrb[25].mxu1  ;;  %v3274_v22 = vld [vmem:[#allocation14 + $0x40] sm:$0xff]  }
 0x752   : > { %v1564_v24 = vpop.f32.mrb[26].mxu1  ;;  %2870 = vmatprep.subr.bf16.mxu0 %v3274_v22 }
 0x753   : > { %v3021_v25 = vpop.f32.mrb[27].mxu1  ;;  %3051 = vmatmul.mubr.msk.bf16.vlgmr.msra.gmra.mrb[32].mxu1 %vm1139_vm7, %v1570_v23  ;;  %v3275_v23 = vld [vmem:[#allocation14 + $0xc0] sm:$0xff]  }
 0x754   : > { %2102 = vmatpush1.bf16.msra.mxu1 %v3229_v53  ;;  %2133 = vmatprep.mubr.bf16.mxu1 %v3686_v14  ;;  %v3291_v53 = vld [vmem:[#allocation14 + $0xe0] sm:$0xff]   ;;  %v1895_v14 = vrot.slane %v1878_v6, %v1894_v9 }
 0x755   : > { %2103 = vmatprep.subr.bf16.mxu1 %v3237_v55  ;;  %v3293_v55 = vld [vmem:[#allocation14 + $0xa0] sm:$0xff]  }
 0x758   : > { %2104 = vmatpush1.bf16.msra.mxu1 %v3235_v57  ;;  %v3295_v57 = vld [vmem:[#allocation14 + $0xe8] sm:$0xff]  }
 0x759   : > { %2105 = vmatprep.subr.bf16.mxu1 %v3243_v59  ;;  %v3297_v59 = vld [vmem:[#allocation14 + $0xa8] sm:$0xff]  }
 0x75c   : > { %2106 = vmatpush1.bf16.msra.mxu1 %v3241_v61  ;;  %v3299_v61 = vld [vmem:[#allocation14 + $0xf0] sm:$0xff]  }
 0x75d   : > { %2107 = vmatprep.subr.bf16.mxu1 %v3249_v63  ;;  %v3301_v63 = vld [vmem:[#allocation14 + $0xb0] sm:$0xff]  }
 0x760   : > { %2108 = vmatpush1.bf16.msra.mxu1 %v3247_v1  ;;  %v3303_v1 = vld [vmem:[#allocation14 + $0xf8] sm:$0xff]  }
 0x761   : > { %2109 = vmatprep.subr.bf16.mxu1 %v3255_v5  ;;  %v1890_v5 = vsub.s32 2, %v4205_v52 }
 0x763   : > { %v1891_v12 = vrot.slane %v1878_v6, %v1890_v5 }
 0x764   : > { %2110 = vmatpush1.bf16.msra.mxu1 %v3253_v4  ;;  %v1882_v4 = vsub.s32 0, %v4205_v52 }
 0x765   : > { %2111 = vmatprep.subr.bf16.mxu1 %v3261_v8  ;;  %v1886_v8 = vsub.s32 1, %v4205_v52 }
 0x768   : > { %2112 = vmatpush1.bf16.msra.mxu1 %v3259_v10  ;;  %v1883_v10 = vrot.slane %v1878_v6, %v1882_v4 }
 0x769   : > { %2113 = vmatprep.subr.bf16.mxu1 %v3267_v13  ;;  %v1887_v13 = vrot.slane %v1878_v6, %v1886_v8 }
 0x76c   : > { %2114 = vmatpush1.bf16.msra.mxu1 %v3265_v17 }
 0x76d   : > { %2115 = vmatprep.subr.bf16.mxu1 %v3273_v19 }
 0x770   : > { %2116 = vmatpush1.bf16.msra.mxu1 %v3271_v21 }
 0x771   : > { %2892 = vmatprep.subr.bf16.mxu1 %v3275_v23 }
 0x77e   : > { %v1636_v26 = vpop.f32.mrb[16].mxu0 }
 0x77f   : > { %v3028_v27 = vpop.f32.mrb[17].mxu0 }
 0x780   : > { %v1639_v28 = vpop.f32.mrb[18].mxu0 }
 0x781   : > { %v3029_v29 = vpop.f32.mrb[19].mxu0 }
 0x7f4   : > { %v1691_v11 = vpop.f32.mrb[28].mxu1 }
 0x7f5   : > { %v1807_v30 = vadd.f32 %v1691_v11, %v1636_v26  ;;  %v3036_v31 = vpop.f32.mrb[29].mxu1 }
 0x7f6   : > { %v1694_v32 = vpop.f32.mrb[30].mxu1  ;;  %v2744_v31 = vld [vmem:[%s4419_s8] ss:$0 sm:$0xff]  ;;  %s4300_s8 = scalar_lea.hbm %s4424_s27, %s2812_s3 }
 0x7f7   : > { %v3037_v33 = vpop.f32.mrb[31].mxu1 }
 0x7f8   : > { %v2745_v33 = vld [vmem:[%s4420_s19] ss:$0 sm:$0xff]  ;;  %s3567_s19 = sshll.u32 %s3687_s7, 4  ;;  %s3568_s19 = int_to_ptr.vmem [resolvable:$false] %s3567_s19 }
 0x7f9   : > { %v1746_v34 = vpop.f32.mrb[20].mxu0  ;;  %s3569_s13 = scalar_lea.vmem %s3568_s19, 256  ;;  %p3570_p11 = scmp.lt.s32.totalorder %s4302_s4, %s3568_s19 }
 0x7fa   : > { %v1808_v35 = vadd.f32 %v1807_v30, %v1746_v34  ;;  %v3044_v36 = vpop.f32.mrb[21].mxu0  ;;  %p3571_p2 = scmp.lt.s32.totalorder %s3569_s13, %s3563_s18 }
 0x7fb   : > { %v1749_v37 = vpop.f32.mrb[22].mxu0  ;;  %v3276_v36 = vld [vmem:[#allocation14] sm:$0xff]  }
 0x7fc   : > { %v3045_v38 = vpop.f32.mrb[23].mxu0  ;;  %v3277_v37 = vld [vmem:[#allocation14 + $0x80] sm:$0xff]   ;;  %p3572_p10 = por %p3571_p2, %p3570_p11 }
 0x7fe   : > { %p3573_p1 = pnand %p3572_p10, %p3566_p7 }
 0x826   : > { %v1801_v39 = vpop.f32.mrb[32].mxu1 }
 0x827   : > { %v1809_v40 = vadd.f32 %v1808_v35, %v1801_v39  ;;  %v3052_v41 = vpop.f32.mrb[33].mxu1  ;;  %v3278_v39 = vld [vmem:[#allocation14 + $0x48] sm:$0xff]  }
 0x828   : > { %v1804_v42 = vpop.f32.mrb[34].mxu1  ;;  %v3280_v41 = vld [vmem:[#allocation14 + $0x8] sm:$0xff]  }
 0x829   : > { %v4269_v44 = vadd.f32 %v3334_v43, %v1809_v40  ;;  %v3053_v45 = vpop.f32.mrb[35].mxu1  ;;  %v3279_v40 = vld [vmem:[#allocation14 + $0xc8] sm:$0xff]   ;;  %v3282_v43 = vld [vmem:[#allocation14 + $0x50] sm:$0xff]  }
 0x82a   : > { %v3281_v42 = vld [vmem:[#allocation14 + $0x88] sm:$0xff]   ;;  %v3283_v45 = vld [vmem:[#allocation14 + $0xd0] sm:$0xff]  }
 0x82b   : > { %1813 = vadd.xlane.f32.xlu1 %v4269_v44 }
 0x8b8   : > { %v1814_v46 = vpop.xlane.xlu1 %1813 }
 0x8b9   : > { %v1815_v47 = vmul.f32 0.0078125, %v1814_v46  ;;  %v3284_v46 = vld [vmem:[#allocation14 + $0x10] sm:$0xff]  }
 0x8bb   : > { %v4273_v48 = vsub.f32 %v4269_v44, %v1815_v47  ;;  %v3285_v47 = vld [vmem:[#allocation14 + $0x90] sm:$0xff]  }
 0x8bd   : > { %v1817_v49 = vmul.f32 %v4273_v48, %v4273_v48 }
 0x8bf   : > { %1818 = vadd.xlane.f32.xlu0 %v1817_v49  ;;  %v3287_v49 = vld [vmem:[#allocation14 + $0xd8] sm:$0xff]  }
 0x94c   : > { %v1819_v15 = vpop.xlane.xlu0 %1818 }
 0x94d   : > { %v1820_v24 = vmul.f32 0.007874016, %v1819_v15 }
 0x94f   : > { %3330 = vrsqrt.f32 %v1820_v24  ;;  %vm1823_vm10 = vcmp.eq.f32.partialorder %v1820_v24, inf  ;;  %v1826_v27 = vand.u32 2147483648, %v1820_v24  ;;  %vm1825_vm11 = vcmp.eq.f32.partialorder %v1820_v24, 0.0 }
 0x959   : > { %v3331_v25 = vpop.eup %3330 }
 0x95a   : > { %v1822_v26 = vmul.f32 %v3331_v25, %v1820_v24 }
 0x95c   : > { %v1824_v28 = vsel %vm1823_vm10, %v1820_v24, %v1822_v26 }
 0x95d   : > { %v1827_v29 = vsel %vm1825_vm11, %v1826_v27, %v1824_v28 }
 0x95e   : > { %v1828_v11 = vadd.f32 1e-06, %v1827_v29 }
 0x960   : > { %3332 = vrcp.f32 %v1828_v11 }
 0x96a   : > { %v3333_v30 = vpop.eup %3332 }
 0x96b   : > { %v1830_v32 = vmul.f32 %v3333_v30, %v4273_v48  ;;  %v3286_v48 = vld [vmem:[#allocation14 + $0x58] sm:$0xff]  }
 0x96d   : > { %v1837_v34 = vmul.f32 %v2744_v31, %v1830_v32 }
 0x96f   : > { %v1844_v35 = vadd.f32 %v2745_v33, %v1837_v34 }
 0x971   : > { %v1845_v38 = vpack.c.bf16 %v1844_v35, %v1844_v35  ;;  %v2778_v35 = vld [vmem:[%s4423_s11] ss:$0 sm:$0xff] }
 0x973   : > { %2093 = vmatmul.mubr.bf16.vlgmr.msra.gmra.mrb[24].mxu0 %v1845_v38  ;;  %2134 = vmatmul.mubr.bf16.vlgmr.msra.gmra.mrb[36].mxu1 %v1845_v38 }
 0x974   : > { %2871 = vmatpush3.bf16.msra.mxu0 %v3276_v36  ;;  %2893 = vmatpush3.bf16.msra.mxu1 %v3277_v37 }
 0x975   : > { %2872 = vmatprep.subr.bf16.mxu0 %v3278_v39  ;;  %2894 = vmatprep.subr.bf16.mxu1 %v3279_v40 }
 0x978   : > { %2873 = vmatpush3.bf16.msra.mxu0 %v3280_v41  ;;  %2895 = vmatpush3.bf16.msra.mxu1 %v3281_v42 }
 0x979   : > { %2874 = vmatprep.subr.bf16.mxu0 %v3282_v43  ;;  %2896 = vmatprep.subr.bf16.mxu1 %v3283_v45 }
 0x97c   : > { %2875 = vmatpush3.bf16.msra.mxu0 %v3284_v46  ;;  %2897 = vmatpush3.bf16.msra.mxu1 %v3285_v47 }
 0x97d   : > { %2876 = vmatprep.subr.bf16.mxu0 %v3286_v48  ;;  %2898 = vmatprep.subr.bf16.mxu1 %v3287_v49 }
 0x980   : > { %2877 = vmatpush3.bf16.msra.mxu0 %v3288_v7  ;;  %2899 = vmatpush3.bf16.msra.mxu1 %v3289_v50 }
 0x981   : > { %2878 = vmatprep.subr.bf16.mxu0 %v3290_v51  ;;  %2900 = vmatprep.subr.bf16.mxu1 %v3291_v53 }
 0x984   : > { %2879 = vmatpush3.bf16.msra.mxu0 %v3292_v54  ;;  %2901 = vmatpush3.bf16.msra.mxu1 %v3293_v55 }
 0x985   : > { %2880 = vmatprep.subr.bf16.mxu0 %v3294_v56  ;;  %2902 = vmatprep.subr.bf16.mxu1 %v3295_v57 }
 0x988   : > { %2881 = vmatpush3.bf16.msra.mxu0 %v3296_v58  ;;  %2903 = vmatpush3.bf16.msra.mxu1 %v3297_v59 }
 0x989   : > { %2882 = vmatprep.subr.bf16.mxu0 %v3298_v60  ;;  %2904 = vmatprep.subr.bf16.mxu1 %v3299_v61 }
 0x98c   : > { %2883 = vmatpush3.bf16.msra.mxu0 %v3300_v62  ;;  %2905 = vmatpush3.bf16.msra.mxu1 %v3301_v63 }
 0x98d   : > { %2884 = vmatprep.subr.bf16.mxu0 %v3302_v0  ;;  %2906 = vmatprep.subr.bf16.mxu1 %v3303_v1 }
 0x990   : > { %2885 = vmatpush3.bf16.msra.mxu0 %v3304_v2  ;;  %2907 = vmatpush3.bf16.msra.mxu1 %v3305_v3 }
 0xa46   : > { %v2094_v16 = vpop.f32.mrb[24].mxu0  ;;  %v2135_v17 = vpop.f32.mrb[36].mxu1 }
 0xa47   : > { %v2095_v18 = vadd.f32 %v2094_v16, %v1883_v10  ;;  %v2136_v19 = vadd.f32 %v2135_v17, %v1891_v12  ;;  %v2096_v20 = vpop.f32.mrb[25].mxu0  ;;  %v2137_v21 = vpop.f32.mrb[37].mxu1 }
 0xa48   : > { %v2097_v22 = vadd.f32 %v2096_v20, %v1887_v13  ;;  %v2138_v23 = vadd.f32 %v2137_v21, %v1895_v14  ;;  %v2098_v15 = vpop.f32.mrb[26].mxu0  ;;  %v2139_v24 = vpop.f32.mrb[38].mxu1 }
 0xa49   : > { %v2142_v25 = vmax.f32 %v2095_v18, 0.0  ;;  %v2144_v26 = vmax.f32 %v2136_v19, 0.0  ;;  %v2099_v27 = vpop.f32.mrb[27].mxu0  ;;  %v2140_v28 = vpop.f32.mrb[39].mxu1 }
 0xa4a   : > { %v2143_v29 = vmax.f32 %v2097_v22, 0.0  ;;  %v2145_v52 = vmax.f32 %v2138_v23, 0.0 }
 0xa4b   : > { %v2146_v31 = vpack.c.bf16 %v2142_v25, %v2142_v25  ;;  %v2148_v32 = vpack.c.bf16 %v2144_v26, %v2144_v26 }
 0xa4c   : > { %v2147_v11 = vpack.c.bf16 %v2143_v29, %v2143_v29  ;;  %v2149_v30 = vpack.c.bf16 %v2145_v52, %v2145_v52 }
 0xa4e   : > { %2445 = vmatprep.mubr.bf16.mxu0 %v2147_v11  ;;  %2485 = vmatprep.mubr.bf16.mxu1 %v2149_v30 }
 0xa4f   : > { %2446 = vmatmul.mubr.bf16.vlgmr.msra.gmra.mrb[28].mxu0 %v2146_v31  ;;  %2486 = vmatmul.mubr.bf16.vlgmr.msra.gmra.mrb[40].mxu1 %v2148_v32 }
 0xb22   : > { %v2886_v33 = vpop.f32.mrb[28].mxu0  ;;  %v2908_v34 = vpop.f32.mrb[40].mxu1 }
 0xb23   : > { %v2887_v36 = vpop.f32.mrb[29].mxu0  ;;  %v2909_v37 = vpop.f32.mrb[41].mxu1 }
 0xb24   : > { %v2888_v38 = vadd.f32 %v2887_v36, %v2886_v33  ;;  %v2910_v39 = vadd.f32 %v2909_v37, %v2908_v34  ;;  %v2889_v40 = vpop.f32.mrb[30].mxu0  ;;  %v2911_v41 = vpop.f32.mrb[42].mxu1 }
 0xb25   : > { %v2890_v42 = vpop.f32.mrb[31].mxu0  ;;  %v2912_v43 = vpop.f32.mrb[43].mxu1 }
 0xb26   : > { %v2448_v45 = vadd.f32 %v2888_v38, %v2778_v35 }
 0xb28   : > { %v2488_v46 = vadd.f32 %v2910_v39, %v2448_v45 }
 0xb2a   : > { %v2493_v47 = vadd.f32 %v2488_v46, %v4269_v44 }
 0xb2c   : > { %2494 = vst [vmem:[%s677_s28] sm:$0xff] %v2493_v47 }
 0xb2d   : > { %3576 = shalt.err (!%p3573_p1)
}
 0xb2e   : > { %s3577_s6 = scalar_lea.hbm %s4300_s8, 128  ;;  %s3581_s5 = scalar_lea.hbm %s4424_s27, 256 }
 0xb2f   : > { %p3578_p5 = scmp.ne.s32.totalorder %s4300_s8, %s3577_s6  ;;  %p3582_p12 = scmp.lt.u32.totalorder %s4300_s8, %s4424_s27 }
 0xb30   : > { %p3583_p6 = scmp.lt.u32.totalorder %s3581_s5, %s3577_s6  ;;  %p3585_p4 = scmp.lt.u32.totalorder %s3577_s6, %s4300_s8 }
 0xb31   : > { %p3579_p8 = pnand %p3578_p5, %p4425_p9 }
 0xb32   : > { %p3584_p13 = por %p3583_p6, %p3582_p12 }
 0xb33   : > { %p3580_p3 = pneg %p3579_p8 }
 0xb34   : > { %p3586_p0 = por %p3585_p4, %p3584_p13 }
 0xb36   : > { %p3587_p7 = pnand %p3586_p0, %p3580_p3 }
 0xb38   : > { %3590 = shalt.err (!%p3587_p7)
}
 0xb39   : > { %3082 = dma.vmem_to_hbm [thread:$0]  (%p4425_p9), %s4302_s4, 128, %s4300_s8, %s2496_s14  }
 0xb3a PF: > { %s2522_s11 = sand.u32 1, %s3645_s21   ;;  %p4426_p11 = scmp.ne.s32.totalorder %s4403_s17, 0 }
 0xb3b   : > { %p4427_p2 = scmp.ge.s32.totalorder %s3665_s26, 2  ;;  %s2523_s3 = scalar_lea.sflag [#allocation4], %s2522_s11 }
 0xb3d   : > { %p3111_p10 = pnand %p4427_p2, %p4426_p11 }
 0xb3f   : > { %3640 = dma.done.wait (!%p3111_p10), %s2523_s3, 128  }
 0xb40   : > { %3642 = vsyncadd (!%p3111_p10), %s2523_s3, 4294967168  ;;  %s38_s26 = sadd.s32 1, %s3665_s26   ;;  %s4428_s21 = smov %s3649_s22 }
 0xb41   : > { %p35_p1 = scmp.ge.s32.totalorder %s38_s26, 4   ;;  %s4429_s22 = smov %s3653_s23 }
 0xb42   : > { %s4430_s23 = smov %s3996_s29  ;;  %s4431_s24 = smov %s3661_s25 }
 0xb43   : > { %s4432_s25 = smov %s4434_s0  ;;  %37 = sbr.rel (!%p35_p1) target bundleno = 27 (0x1b), region = 168 }
 0xb4a   :  { %2528 = vsyncpa [#allocation3], 1 }
 0xb4b   :  { %2530 = vsyncpa [#allocation3 + $0x1], 1 }
 0xb4c   :  { %2531 = vsyncpa [#allocation6], 1 }
 0xb4d   :  { %2533 = vsyncpa [#allocation6 + $0x1], 1 }
 0xb4e   :  { %2534 = vsyncpa [#allocation9], 1 }
 0xb4f   :  { %2535 = vsyncpa [#allocation12], 1 }
 0xb50   :  { %2536 = vsyncpa [#allocation15], 1 }
 0xb51   :  { %2537 = vsyncpa [#allocation4], 1 }
 0xb52   :  { %2539 = vsyncpa [#allocation4 + $0x1], 1 }

</bundles_post_ra>
